<compile_context>
chip_gen: v6e
topology: v6e:2x2x1
jax: 0.10.0
libtpu: 0.0.40
codegen_flags: <defaults>
</compile_context>

<pallas_src>
import jax
import jax.numpy as jnp
import numpy as np
from jax.experimental import pallas as pl
from jax.experimental.pallas import tpu as pltpu


def _round_up(x, m):
    return (x + m - 1) // m * m


def gru_fc_kernel(x_ref, w_ih_ref, w_hh_ref, b_i_ref, b_hn_ref,
                  w_fc_ref, b_fc_ref, out_ref):
    """Single-layer GRU over the full sequence + final Linear, all in VMEM.

    x_ref    : (T, Bp, Ip)    time-major, zero-padded input
    w_ih_ref : (Ip, 3*Hp)     [W_ir | W_iz | W_in], transposed, per-gate padded
    w_hh_ref : (Hp, 3*Hp)     [W_hr | W_hz | W_hn], transposed, per-gate padded
    b_i_ref  : (1, 3*Hp)      [b_ir+b_hr | b_iz+b_hz | b_in]
    b_hn_ref : (1, Hp)        b_hn (must stay inside the r * (...) term)
    w_fc_ref : (Hp, Op)       fc weight, transposed + padded
    b_fc_ref : (1, Op)
    out_ref  : (Bp, Op)
    """
    T, Bp, Ip = x_ref.shape
    Hp = w_hh_ref.shape[0]

    # ---- Hoisted input projection: one matmul for the whole sequence. ----
    x_all = x_ref[...].reshape(T * Bp, Ip)                      # (T*Bp, Ip)
    gi_all = jnp.dot(x_all, w_ih_ref[...],
                     preferred_element_type=jnp.float32) + b_i_ref[...]

    w_hh = w_hh_ref[...]                                        # (Hp, 3Hp)
    b_hn = b_hn_ref[...]                                        # (1, Hp)

    # ---- Recurrence: fully unrolled (T is small & static). ----
    h = jnp.zeros((Bp, Hp), jnp.float32)
    for t in range(T):
        gi = gi_all[t * Bp:(t + 1) * Bp, :]                     # (Bp, 3Hp), static slice
        gh = jnp.dot(h, w_hh, preferred_element_type=jnp.float32)
        # Gate slices are lane-aligned (each gate block is Hp = k*128 lanes).
        i_r, i_z, i_n = gi[:, 0:Hp], gi[:, Hp:2 * Hp], gi[:, 2 * Hp:3 * Hp]
        h_r, h_z, h_n = gh[:, 0:Hp], gh[:, Hp:2 * Hp], gh[:, 2 * Hp:3 * Hp]
        r = jax.nn.sigmoid(i_r + h_r)
        z = jax.nn.sigmoid(i_z + h_z)
        n = jnp.tanh(i_n + r * (h_n + b_hn))
        h = (1.0 - z) * n + z * h                               # (Bp, Hp)

    # ---- Final Linear head (lane-dense (Bp, Op) store). ----
    out_ref[...] = (jnp.dot(h, w_fc_ref[...],
                            preferred_element_type=jnp.float32)
                    + b_fc_ref[...])


def stock_prediction_forward(x_btf, params):
    """x_btf: (B, T, I) batch_first input (matches PyTorch)."""
    B, T, I = x_btf.shape
    H = params["w_hh"].shape[1]
    O = params["w_fc"].shape[0]

    Bp = _round_up(B, 8)        # sublanes
    Ip = _round_up(I, 128)      # lanes (contraction dim of input proj)
    Hp = _round_up(H, 128)      # lanes (per-gate block)
    Op = _round_up(O, 128)      # lanes (output store)

    f32 = jnp.float32
    w_ih = params["w_ih"].astype(f32)      # (3H, I), gate order (r, z, n)
    w_hh = params["w_hh"].astype(f32)      # (3H, H)
    b_ih = params["b_ih"].astype(f32)      # (3H,)
    b_hh = params["b_hh"].astype(f32)      # (3H,)

    # Time-major, zero-padded input: (T, Bp, Ip).
    x_tbf = jnp.transpose(x_btf, (1, 0, 2)).astype(f32)
    x_pad = jnp.zeros((T, Bp, Ip), f32).at[:, :B, :I].set(x_tbf)

    # Per-gate transposed + padded weight blocks, concatenated along lanes.
    def pack_w(w_3h, in_dim, in_pad):
        blocks = []
        for g in range(3):
            blk = jnp.zeros((in_pad, Hp), f32)
            blk = blk.at[:in_dim, :H].set(w_3h[g * H:(g + 1) * H, :].T)
            blocks.append(blk)
        return jnp.concatenate(blocks, axis=1)                  # (in_pad, 3Hp)

    w_ih_cat = pack_w(w_ih, I, Ip)                              # (Ip, 3Hp)
    w_hh_cat = pack_w(w_hh, H, Hp)                              # (Hp, 3Hp)

    def pad_bias(b_h):
        return jnp.zeros((1, Hp), f32).at[0, :H].set(b_h)

    b_r = pad_bias(b_ih[0:H] + b_hh[0:H])          # fold b_hr into input proj
    b_z = pad_bias(b_ih[H:2 * H] + b_hh[H:2 * H])  # fold b_hz into input proj
    b_in = pad_bias(b_ih[2 * H:3 * H])
    b_hn = pad_bias(b_hh[2 * H:3 * H])             # stays inside r * (...)
    b_i_cat = jnp.concatenate([b_r, b_z, b_in], axis=1)         # (1, 3Hp)

    w_fc = jnp.zeros((Hp, Op), f32).at[:H, :O].set(params["w_fc"].T.astype(f32))
    b_fc = jnp.zeros((1, Op), f32).at[0, :O].set(params["b_fc"].astype(f32))

    out_pad = pl.pallas_call(
        gru_fc_kernel,
        out_shape=jax.ShapeDtypeStruct((Bp, Op), f32),
        in_specs=[pl.BlockSpec(memory_space=pltpu.MemorySpace.VMEM)] * 7,
        out_specs=pl.BlockSpec(memory_space=pltpu.MemorySpace.VMEM),
    )(x_pad, w_ih_cat, w_hh_cat, b_i_cat, b_hn, w_fc, b_fc)

    return out_pad[:B, :O]


def reference_forward(x_btf, params):
    """Pure-JAX reference mirroring torch.nn.GRU + Linear."""
    B, T, I = x_btf.shape
    H = params["w_hh"].shape[1]
    h = jnp.zeros((B, H), jnp.float32)
    for t in range(T):
        x_t = x_btf[:, t, :]
        gi = x_t @ params["w_ih"].T + params["b_ih"]
        gh = h @ params["w_hh"].T + params["b_hh"]
        i_r, i_z, i_n = gi[:, :H], gi[:, H:2 * H], gi[:, 2 * H:]
        h_r, h_z, h_n = gh[:, :H], gh[:, H:2 * H], gh[:, 2 * H:]
        r = jax.nn.sigmoid(i_r + h_r)
        z = jax.nn.sigmoid(i_z + h_z)
        n = jnp.tanh(i_n + r * h_n)
        h = (1.0 - z) * n + z * h
    return h @ params["w_fc"].T + params["b_fc"]


def init_params(key, input_size, hidden_size, output_size):
    """Deterministic init, U(-1/sqrt(H), 1/sqrt(H)) like PyTorch defaults."""
    ks = jax.random.split(key, 6)
    bound = 1.0 / np.sqrt(hidden_size)
    u = lambda k, shape: jax.random.uniform(
        k, shape, jnp.float32, minval=-bound, maxval=bound)
    return {
        "w_ih": u(ks[0], (3 * hidden_size, input_size)),   # gates (r, z, n)
        "w_hh": u(ks[1], (3 * hidden_size, hidden_size)),
        "b_ih": u(ks[2], (3 * hidden_size,)),
        "b_hh": u(ks[3], (3 * hidden_size,)),
        "w_fc": u(ks[4], (output_size, hidden_size)),
        "b_fc": u(ks[5], (output_size,)),
    }


if __name__ == "__main__":
    INPUT_SIZE, HIDDEN_SIZE, OUTPUT_SIZE = 8, 32, 4
    BATCH, SEQ = 4, 8

    key = jax.random.PRNGKey(0)
    k_x, k_p = jax.random.split(key)
    x = jax.random.normal(k_x, (BATCH, SEQ, INPUT_SIZE), jnp.float32)
    params = init_params(k_p, INPUT_SIZE, HIDDEN_SIZE, OUTPUT_SIZE)

    out = stock_prediction_forward(x, params)
    out = jax.block_until_ready(out)

    ref = jax.block_until_ready(reference_forward(x, params))
    np.testing.assert_allclose(np.asarray(out), np.asarray(ref),
                               rtol=1e-5, atol=1e-5)
    assert out.shape == (BATCH, OUTPUT_SIZE)
    print("KERNEL_OK")
</pallas_src>

<mosaic_0001>
module attributes {stable_mosaic.version = 11 : i64} {
  func.func @gru_fc_kernel(%arg0: memref<8x8x128xf32, #tpu.memory_space<vmem>>, %arg1: memref<128x384xf32, #tpu.memory_space<vmem>>, %arg2: memref<128x384xf32, #tpu.memory_space<vmem>>, %arg3: memref<1x384xf32, #tpu.memory_space<vmem>>, %arg4: memref<1x128xf32, #tpu.memory_space<vmem>>, %arg5: memref<128x128xf32, #tpu.memory_space<vmem>>, %arg6: memref<1x128xf32, #tpu.memory_space<vmem>>, %arg7: memref<8x128xf32, #tpu.memory_space<vmem>>) attributes {dimension_semantics = [], scalar_prefetch = 0 : i64, scratch_operands = 0 : i64, tpu.core_type = #tpu.core_type<tc>} {
    %c0 = arith.constant 0 : index
    %c0_0 = arith.constant 0 : index
    %c0_1 = arith.constant 0 : index
    %0 = vector.load %arg0[%c0, %c0_0, %c0_1] : memref<8x8x128xf32, #tpu.memory_space<vmem>>, vector<8x8x128xf32>
    %1 = vector.shape_cast %0 : vector<8x8x128xf32> to vector<64x128xf32>
    %c0_2 = arith.constant 0 : index
    %c0_3 = arith.constant 0 : index
    %2 = vector.load %arg1[%c0_2, %c0_3] : memref<128x384xf32, #tpu.memory_space<vmem>>, vector<128x384xf32>
    %cst = arith.constant dense<0.000000e+00> : vector<64x384xf32>
    %3 = tpu.matmul %1, %2, %cst {dimension_numbers = #tpu.dot_dimension_numbers<[1], [0], [0], [1], [0, 0, 1, 1], [], []>} : vector<64x128xf32>, vector<128x384xf32>, vector<64x384xf32> -> vector<64x384xf32>
    %c0_4 = arith.constant 0 : index
    %c0_5 = arith.constant 0 : index
    %4 = vector.load %arg3[%c0_4, %c0_5] : memref<1x384xf32, #tpu.memory_space<vmem>>, vector<1x384xf32>
    %5 = vector.broadcast %4 : vector<1x384xf32> to vector<64x384xf32>
    %6 = arith.addf %3, %5 : vector<64x384xf32>
    %c0_6 = arith.constant 0 : index
    %c0_7 = arith.constant 0 : index
    %7 = vector.load %arg2[%c0_6, %c0_7] : memref<128x384xf32, #tpu.memory_space<vmem>>, vector<128x384xf32>
    %c0_8 = arith.constant 0 : index
    %c0_9 = arith.constant 0 : index
    %8 = vector.load %arg4[%c0_8, %c0_9] : memref<1x128xf32, #tpu.memory_space<vmem>>, vector<1x128xf32>
    %cst_10 = arith.constant 0.000000e+00 : f32
    %9 = vector.broadcast %cst_10 : f32 to vector<8x128xf32>
    %10 = vector.extract_strided_slice %6 {offsets = [0, 0], sizes = [8, 384], strides = [1, 1]} : vector<64x384xf32> to vector<8x384xf32>
    %cst_11 = arith.constant dense<0.000000e+00> : vector<8x384xf32>
    %11 = tpu.matmul %9, %7, %cst_11 {dimension_numbers = #tpu.dot_dimension_numbers<[1], [0], [0], [1], [0, 0, 1, 1], [], []>} : vector<8x128xf32>, vector<128x384xf32>, vector<8x384xf32> -> vector<8x384xf32>
    %12 = vector.extract_strided_slice %10 {offsets = [0, 0], sizes = [8, 128], strides = [1, 1]} : vector<8x384xf32> to vector<8x128xf32>
    %13 = vector.extract_strided_slice %10 {offsets = [0, 128], sizes = [8, 128], strides = [1, 1]} : vector<8x384xf32> to vector<8x128xf32>
    %14 = vector.extract_strided_slice %10 {offsets = [0, 256], sizes = [8, 128], strides = [1, 1]} : vector<8x384xf32> to vector<8x128xf32>
    %15 = vector.extract_strided_slice %11 {offsets = [0, 0], sizes = [8, 128], strides = [1, 1]} : vector<8x384xf32> to vector<8x128xf32>
    %16 = vector.extract_strided_slice %11 {offsets = [0, 128], sizes = [8, 128], strides = [1, 1]} : vector<8x384xf32> to vector<8x128xf32>
    %17 = vector.extract_strided_slice %11 {offsets = [0, 256], sizes = [8, 128], strides = [1, 1]} : vector<8x384xf32> to vector<8x128xf32>
    %18 = arith.addf %12, %15 : vector<8x128xf32>
    %19 = arith.negf %18 : vector<8x128xf32>
    %20 = math.exp %19 : vector<8x128xf32>
    %cst_12 = arith.constant 1.000000e+00 : f32
    %21 = vector.broadcast %cst_12 : f32 to vector<8x128xf32>
    %22 = arith.addf %21, %20 : vector<8x128xf32>
    %23 = arith.divf %21, %22 : vector<8x128xf32>
    %24 = arith.addf %13, %16 : vector<8x128xf32>
    %25 = arith.negf %24 : vector<8x128xf32>
    %26 = math.exp %25 : vector<8x128xf32>
    %cst_13 = arith.constant 1.000000e+00 : f32
    %27 = vector.broadcast %cst_13 : f32 to vector<8x128xf32>
    %28 = arith.addf %27, %26 : vector<8x128xf32>
    %29 = arith.divf %27, %28 : vector<8x128xf32>
    %30 = vector.broadcast %8 : vector<1x128xf32> to vector<8x128xf32>
    %31 = arith.addf %17, %30 : vector<8x128xf32>
    %32 = arith.mulf %23, %31 : vector<8x128xf32>
    %33 = arith.addf %14, %32 : vector<8x128xf32>
    %34 = math.tanh %33 : vector<8x128xf32>
    %cst_14 = arith.constant 1.000000e+00 : f32
    %35 = vector.broadcast %cst_14 : f32 to vector<8x128xf32>
    %36 = arith.subf %35, %29 : vector<8x128xf32>
    %37 = arith.mulf %36, %34 : vector<8x128xf32>
    %38 = arith.mulf %29, %9 : vector<8x128xf32>
    %39 = arith.addf %37, %38 : vector<8x128xf32>
    %40 = vector.extract_strided_slice %6 {offsets = [8, 0], sizes = [8, 384], strides = [1, 1]} : vector<64x384xf32> to vector<8x384xf32>
    %cst_15 = arith.constant dense<0.000000e+00> : vector<8x384xf32>
    %41 = tpu.matmul %39, %7, %cst_15 {dimension_numbers = #tpu.dot_dimension_numbers<[1], [0], [0], [1], [0, 0, 1, 1], [], []>} : vector<8x128xf32>, vector<128x384xf32>, vector<8x384xf32> -> vector<8x384xf32>
    %42 = vector.extract_strided_slice %40 {offsets = [0, 0], sizes = [8, 128], strides = [1, 1]} : vector<8x384xf32> to vector<8x128xf32>
    %43 = vector.extract_strided_slice %40 {offsets = [0, 128], sizes = [8, 128], strides = [1, 1]} : vector<8x384xf32> to vector<8x128xf32>
    %44 = vector.extract_strided_slice %40 {offsets = [0, 256], sizes = [8, 128], strides = [1, 1]} : vector<8x384xf32> to vector<8x128xf32>
    %45 = vector.extract_strided_slice %41 {offsets = [0, 0], sizes = [8, 128], strides = [1, 1]} : vector<8x384xf32> to vector<8x128xf32>
    %46 = vector.extract_strided_slice %41 {offsets = [0, 128], sizes = [8, 128], strides = [1, 1]} : vector<8x384xf32> to vector<8x128xf32>
    %47 = vector.extract_strided_slice %41 {offsets = [0, 256], sizes = [8, 128], strides = [1, 1]} : vector<8x384xf32> to vector<8x128xf32>
    %48 = arith.addf %42, %45 : vector<8x128xf32>
    %49 = arith.negf %48 : vector<8x128xf32>
    %50 = math.exp %49 : vector<8x128xf32>
    %cst_16 = arith.constant 1.000000e+00 : f32
    %51 = vector.broadcast %cst_16 : f32 to vector<8x128xf32>
    %52 = arith.addf %51, %50 : vector<8x128xf32>
    %53 = arith.divf %51, %52 : vector<8x128xf32>
    %54 = arith.addf %43, %46 : vector<8x128xf32>
    %55 = arith.negf %54 : vector<8x128xf32>
    %56 = math.exp %55 : vector<8x128xf32>
    %cst_17 = arith.constant 1.000000e+00 : f32
    %57 = vector.broadcast %cst_17 : f32 to vector<8x128xf32>
    %58 = arith.addf %57, %56 : vector<8x128xf32>
    %59 = arith.divf %57, %58 : vector<8x128xf32>
    %60 = vector.broadcast %8 : vector<1x128xf32> to vector<8x128xf32>
    %61 = arith.addf %47, %60 : vector<8x128xf32>
    %62 = arith.mulf %53, %61 : vector<8x128xf32>
    %63 = arith.addf %44, %62 : vector<8x128xf32>
    %64 = math.tanh %63 : vector<8x128xf32>
    %cst_18 = arith.constant 1.000000e+00 : f32
    %65 = vector.broadcast %cst_18 : f32 to vector<8x128xf32>
    %66 = arith.subf %65, %59 : vector<8x128xf32>
    %67 = arith.mulf %66, %64 : vector<8x128xf32>
    %68 = arith.mulf %59, %39 : vector<8x128xf32>
    %69 = arith.addf %67, %68 : vector<8x128xf32>
    %70 = vector.extract_strided_slice %6 {offsets = [16, 0], sizes = [8, 384], strides = [1, 1]} : vector<64x384xf32> to vector<8x384xf32>
    %cst_19 = arith.constant dense<0.000000e+00> : vector<8x384xf32>
    %71 = tpu.matmul %69, %7, %cst_19 {dimension_numbers = #tpu.dot_dimension_numbers<[1], [0], [0], [1], [0, 0, 1, 1], [], []>} : vector<8x128xf32>, vector<128x384xf32>, vector<8x384xf32> -> vector<8x384xf32>
    %72 = vector.extract_strided_slice %70 {offsets = [0, 0], sizes = [8, 128], strides = [1, 1]} : vector<8x384xf32> to vector<8x128xf32>
    %73 = vector.extract_strided_slice %70 {offsets = [0, 128], sizes = [8, 128], strides = [1, 1]} : vector<8x384xf32> to vector<8x128xf32>
    %74 = vector.extract_strided_slice %70 {offsets = [0, 256], sizes = [8, 128], strides = [1, 1]} : vector<8x384xf32> to vector<8x128xf32>
    %75 = vector.extract_strided_slice %71 {offsets = [0, 0], sizes = [8, 128], strides = [1, 1]} : vector<8x384xf32> to vector<8x128xf32>
    %76 = vector.extract_strided_slice %71 {offsets = [0, 128], sizes = [8, 128], strides = [1, 1]} : vector<8x384xf32> to vector<8x128xf32>
    %77 = vector.extract_strided_slice %71 {offsets = [0, 256], sizes = [8, 128], strides = [1, 1]} : vector<8x384xf32> to vector<8x128xf32>
    %78 = arith.addf %72, %75 : vector<8x128xf32>
    %79 = arith.negf %78 : vector<8x128xf32>
    %80 = math.exp %79 : vector<8x128xf32>
    %cst_20 = arith.constant 1.000000e+00 : f32
    %81 = vector.broadcast %cst_20 : f32 to vector<8x128xf32>
    %82 = arith.addf %81, %80 : vector<8x128xf32>
    %83 = arith.divf %81, %82 : vector<8x128xf32>
    %84 = arith.addf %73, %76 : vector<8x128xf32>
    %85 = arith.negf %84 : vector<8x128xf32>
    %86 = math.exp %85 : vector<8x128xf32>
    %cst_21 = arith.constant 1.000000e+00 : f32
    %87 = vector.broadcast %cst_21 : f32 to vector<8x128xf32>
    %88 = arith.addf %87, %86 : vector<8x128xf32>
    %89 = arith.divf %87, %88 : vector<8x128xf32>
    %90 = vector.broadcast %8 : vector<1x128xf32> to vector<8x128xf32>
    %91 = arith.addf %77, %90 : vector<8x128xf32>
    %92 = arith.mulf %83, %91 : vector<8x128xf32>
    %93 = arith.addf %74, %92 : vector<8x128xf32>
    %94 = math.tanh %93 : vector<8x128xf32>
    %cst_22 = arith.constant 1.000000e+00 : f32
    %95 = vector.broadcast %cst_22 : f32 to vector<8x128xf32>
    %96 = arith.subf %95, %89 : vector<8x128xf32>
    %97 = arith.mulf %96, %94 : vector<8x128xf32>
    %98 = arith.mulf %89, %69 : vector<8x128xf32>
    %99 = arith.addf %97, %98 : vector<8x128xf32>
    %100 = vector.extract_strided_slice %6 {offsets = [24, 0], sizes = [8, 384], strides = [1, 1]} : vector<64x384xf32> to vector<8x384xf32>
    %cst_23 = arith.constant dense<0.000000e+00> : vector<8x384xf32>
    %101 = tpu.matmul %99, %7, %cst_23 {dimension_numbers = #tpu.dot_dimension_numbers<[1], [0], [0], [1], [0, 0, 1, 1], [], []>} : vector<8x128xf32>, vector<128x384xf32>, vector<8x384xf32> -> vector<8x384xf32>
    %102 = vector.extract_strided_slice %100 {offsets = [0, 0], sizes = [8, 128], strides = [1, 1]} : vector<8x384xf32> to vector<8x128xf32>
    %103 = vector.extract_strided_slice %100 {offsets = [0, 128], sizes = [8, 128], strides = [1, 1]} : vector<8x384xf32> to vector<8x128xf32>
    %104 = vector.extract_strided_slice %100 {offsets = [0, 256], sizes = [8, 128], strides = [1, 1]} : vector<8x384xf32> to vector<8x128xf32>
    %105 = vector.extract_strided_slice %101 {offsets = [0, 0], sizes = [8, 128], strides = [1, 1]} : vector<8x384xf32> to vector<8x128xf32>
    %106 = vector.extract_strided_slice %101 {offsets = [0, 128], sizes = [8, 128], strides = [1, 1]} : vector<8x384xf32> to vector<8x128xf32>
    %107 = vector.extract_strided_slice %101 {offsets = [0, 256], sizes = [8, 128], strides = [1, 1]} : vector<8x384xf32> to vector<8x128xf32>
    %108 = arith.addf %102, %105 : vector<8x128xf32>
    %109 = arith.negf %108 : vector<8x128xf32>
    %110 = math.exp %109 : vector<8x128xf32>
    %cst_24 = arith.constant 1.000000e+00 : f32
    %111 = vector.broadcast %cst_24 : f32 to vector<8x128xf32>
    %112 = arith.addf %111, %110 : vector<8x128xf32>
    %113 = arith.divf %111, %112 : vector<8x128xf32>
    %114 = arith.addf %103, %106 : vector<8x128xf32>
    %115 = arith.negf %114 : vector<8x128xf32>
    %116 = math.exp %115 : vector<8x128xf32>
    %cst_25 = arith.constant 1.000000e+00 : f32
    %117 = vector.broadcast %cst_25 : f32 to vector<8x128xf32>
    %118 = arith.addf %117, %116 : vector<8x128xf32>
    %119 = arith.divf %117, %118 : vector<8x128xf32>
    %120 = vector.broadcast %8 : vector<1x128xf32> to vector<8x128xf32>
    %121 = arith.addf %107, %120 : vector<8x128xf32>
    %122 = arith.mulf %113, %121 : vector<8x128xf32>
    %123 = arith.addf %104, %122 : vector<8x128xf32>
    %124 = math.tanh %123 : vector<8x128xf32>
    %cst_26 = arith.constant 1.000000e+00 : f32
    %125 = vector.broadcast %cst_26 : f32 to vector<8x128xf32>
    %126 = arith.subf %125, %119 : vector<8x128xf32>
    %127 = arith.mulf %126, %124 : vector<8x128xf32>
    %128 = arith.mulf %119, %99 : vector<8x128xf32>
    %129 = arith.addf %127, %128 : vector<8x128xf32>
    %130 = vector.extract_strided_slice %6 {offsets = [32, 0], sizes = [8, 384], strides = [1, 1]} : vector<64x384xf32> to vector<8x384xf32>
    %cst_27 = arith.constant dense<0.000000e+00> : vector<8x384xf32>
    %131 = tpu.matmul %129, %7, %cst_27 {dimension_numbers = #tpu.dot_dimension_numbers<[1], [0], [0], [1], [0, 0, 1, 1], [], []>} : vector<8x128xf32>, vector<128x384xf32>, vector<8x384xf32> -> vector<8x384xf32>
    %132 = vector.extract_strided_slice %130 {offsets = [0, 0], sizes = [8, 128], strides = [1, 1]} : vector<8x384xf32> to vector<8x128xf32>
    %133 = vector.extract_strided_slice %130 {offsets = [0, 128], sizes = [8, 128], strides = [1, 1]} : vector<8x384xf32> to vector<8x128xf32>
    %134 = vector.extract_strided_slice %130 {offsets = [0, 256], sizes = [8, 128], strides = [1, 1]} : vector<8x384xf32> to vector<8x128xf32>
    %135 = vector.extract_strided_slice %131 {offsets = [0, 0], sizes = [8, 128], strides = [1, 1]} : vector<8x384xf32> to vector<8x128xf32>
    %136 = vector.extract_strided_slice %131 {offsets = [0, 128], sizes = [8, 128], strides = [1, 1]} : vector<8x384xf32> to vector<8x128xf32>
    %137 = vector.extract_strided_slice %131 {offsets = [0, 256], sizes = [8, 128], strides = [1, 1]} : vector<8x384xf32> to vector<8x128xf32>
    %138 = arith.addf %132, %135 : vector<8x128xf32>
    %139 = arith.negf %138 : vector<8x128xf32>
    %140 = math.exp %139 : vector<8x128xf32>
    %cst_28 = arith.constant 1.000000e+00 : f32
    %141 = vector.broadcast %cst_28 : f32 to vector<8x128xf32>
    %142 = arith.addf %141, %140 : vector<8x128xf32>
    %143 = arith.divf %141, %142 : vector<8x128xf32>
    %144 = arith.addf %133, %136 : vector<8x128xf32>
    %145 = arith.negf %144 : vector<8x128xf32>
    %146 = math.exp %145 : vector<8x128xf32>
    %cst_29 = arith.constant 1.000000e+00 : f32
    %147 = vector.broadcast %cst_29 : f32 to vector<8x128xf32>
    %148 = arith.addf %147, %146 : vector<8x128xf32>
    %149 = arith.divf %147, %148 : vector<8x128xf32>
    %150 = vector.broadcast %8 : vector<1x128xf32> to vector<8x128xf32>
    %151 = arith.addf %137, %150 : vector<8x128xf32>
    %152 = arith.mulf %143, %151 : vector<8x128xf32>
    %153 = arith.addf %134, %152 : vector<8x128xf32>
    %154 = math.tanh %153 : vector<8x128xf32>
    %cst_30 = arith.constant 1.000000e+00 : f32
    %155 = vector.broadcast %cst_30 : f32 to vector<8x128xf32>
    %156 = arith.subf %155, %149 : vector<8x128xf32>
    %157 = arith.mulf %156, %154 : vector<8x128xf32>
    %158 = arith.mulf %149, %129 : vector<8x128xf32>
    %159 = arith.addf %157, %158 : vector<8x128xf32>
    %160 = vector.extract_strided_slice %6 {offsets = [40, 0], sizes = [8, 384], strides = [1, 1]} : vector<64x384xf32> to vector<8x384xf32>
    %cst_31 = arith.constant dense<0.000000e+00> : vector<8x384xf32>
    %161 = tpu.matmul %159, %7, %cst_31 {dimension_numbers = #tpu.dot_dimension_numbers<[1], [0], [0], [1], [0, 0, 1, 1], [], []>} : vector<8x128xf32>, vector<128x384xf32>, vector<8x384xf32> -> vector<8x384xf32>
    %162 = vector.extract_strided_slice %160 {offsets = [0, 0], sizes = [8, 128], strides = [1, 1]} : vector<8x384xf32> to vector<8x128xf32>
    %163 = vector.extract_strided_slice %160 {offsets = [0, 128], sizes = [8, 128], strides = [1, 1]} : vector<8x384xf32> to vector<8x128xf32>
    %164 = vector.extract_strided_slice %160 {offsets = [0, 256], sizes = [8, 128], strides = [1, 1]} : vector<8x384xf32> to vector<8x128xf32>
    %165 = vector.extract_strided_slice %161 {offsets = [0, 0], sizes = [8, 128], strides = [1, 1]} : vector<8x384xf32> to vector<8x128xf32>
    %166 = vector.extract_strided_slice %161 {offsets = [0, 128], sizes = [8, 128], strides = [1, 1]} : vector<8x384xf32> to vector<8x128xf32>
    %167 = vector.extract_strided_slice %161 {offsets = [0, 256], sizes = [8, 128], strides = [1, 1]} : vector<8x384xf32> to vector<8x128xf32>
    %168 = arith.addf %162, %165 : vector<8x128xf32>
    %169 = arith.negf %168 : vector<8x128xf32>
    %170 = math.exp %169 : vector<8x128xf32>
    %cst_32 = arith.constant 1.000000e+00 : f32
    %171 = vector.broadcast %cst_32 : f32 to vector<8x128xf32>
    %172 = arith.addf %171, %170 : vector<8x128xf32>
    %173 = arith.divf %171, %172 : vector<8x128xf32>
    %174 = arith.addf %163, %166 : vector<8x128xf32>
    %175 = arith.negf %174 : vector<8x128xf32>
    %176 = math.exp %175 : vector<8x128xf32>
    %cst_33 = arith.constant 1.000000e+00 : f32
    %177 = vector.broadcast %cst_33 : f32 to vector<8x128xf32>
    %178 = arith.addf %177, %176 : vector<8x128xf32>
    %179 = arith.divf %177, %178 : vector<8x128xf32>
    %180 = vector.broadcast %8 : vector<1x128xf32> to vector<8x128xf32>
    %181 = arith.addf %167, %180 : vector<8x128xf32>
    %182 = arith.mulf %173, %181 : vector<8x128xf32>
    %183 = arith.addf %164, %182 : vector<8x128xf32>
    %184 = math.tanh %183 : vector<8x128xf32>
    %cst_34 = arith.constant 1.000000e+00 : f32
    %185 = vector.broadcast %cst_34 : f32 to vector<8x128xf32>
    %186 = arith.subf %185, %179 : vector<8x128xf32>
    %187 = arith.mulf %186, %184 : vector<8x128xf32>
    %188 = arith.mulf %179, %159 : vector<8x128xf32>
    %189 = arith.addf %187, %188 : vector<8x128xf32>
    %190 = vector.extract_strided_slice %6 {offsets = [48, 0], sizes = [8, 384], strides = [1, 1]} : vector<64x384xf32> to vector<8x384xf32>
    %cst_35 = arith.constant dense<0.000000e+00> : vector<8x384xf32>
    %191 = tpu.matmul %189, %7, %cst_35 {dimension_numbers = #tpu.dot_dimension_numbers<[1], [0], [0], [1], [0, 0, 1, 1], [], []>} : vector<8x128xf32>, vector<128x384xf32>, vector<8x384xf32> -> vector<8x384xf32>
    %192 = vector.extract_strided_slice %190 {offsets = [0, 0], sizes = [8, 128], strides = [1, 1]} : vector<8x384xf32> to vector<8x128xf32>
    %193 = vector.extract_strided_slice %190 {offsets = [0, 128], sizes = [8, 128], strides = [1, 1]} : vector<8x384xf32> to vector<8x128xf32>
    %194 = vector.extract_strided_slice %190 {offsets = [0, 256], sizes = [8, 128], strides = [1, 1]} : vector<8x384xf32> to vector<8x128xf32>
    %195 = vector.extract_strided_slice %191 {offsets = [0, 0], sizes = [8, 128], strides = [1, 1]} : vector<8x384xf32> to vector<8x128xf32>
    %196 = vector.extract_strided_slice %191 {offsets = [0, 128], sizes = [8, 128], strides = [1, 1]} : vector<8x384xf32> to vector<8x128xf32>
    %197 = vector.extract_strided_slice %191 {offsets = [0, 256], sizes = [8, 128], strides = [1, 1]} : vector<8x384xf32> to vector<8x128xf32>
    %198 = arith.addf %192, %195 : vector<8x128xf32>
    %199 = arith.negf %198 : vector<8x128xf32>
    %200 = math.exp %199 : vector<8x128xf32>
    %cst_36 = arith.constant 1.000000e+00 : f32
    %201 = vector.broadcast %cst_36 : f32 to vector<8x128xf32>
    %202 = arith.addf %201, %200 : vector<8x128xf32>
    %203 = arith.divf %201, %202 : vector<8x128xf32>
    %204 = arith.addf %193, %196 : vector<8x128xf32>
    %205 = arith.negf %204 : vector<8x128xf32>
    %206 = math.exp %205 : vector<8x128xf32>
    %cst_37 = arith.constant 1.000000e+00 : f32
    %207 = vector.broadcast %cst_37 : f32 to vector<8x128xf32>
    %208 = arith.addf %207, %206 : vector<8x128xf32>
    %209 = arith.divf %207, %208 : vector<8x128xf32>
    %210 = vector.broadcast %8 : vector<1x128xf32> to vector<8x128xf32>
    %211 = arith.addf %197, %210 : vector<8x128xf32>
    %212 = arith.mulf %203, %211 : vector<8x128xf32>
    %213 = arith.addf %194, %212 : vector<8x128xf32>
    %214 = math.tanh %213 : vector<8x128xf32>
    %cst_38 = arith.constant 1.000000e+00 : f32
    %215 = vector.broadcast %cst_38 : f32 to vector<8x128xf32>
    %216 = arith.subf %215, %209 : vector<8x128xf32>
    %217 = arith.mulf %216, %214 : vector<8x128xf32>
    %218 = arith.mulf %209, %189 : vector<8x128xf32>
    %219 = arith.addf %217, %218 : vector<8x128xf32>
    %220 = vector.extract_strided_slice %6 {offsets = [56, 0], sizes = [8, 384], strides = [1, 1]} : vector<64x384xf32> to vector<8x384xf32>
    %cst_39 = arith.constant dense<0.000000e+00> : vector<8x384xf32>
    %221 = tpu.matmul %219, %7, %cst_39 {dimension_numbers = #tpu.dot_dimension_numbers<[1], [0], [0], [1], [0, 0, 1, 1], [], []>} : vector<8x128xf32>, vector<128x384xf32>, vector<8x384xf32> -> vector<8x384xf32>
    %222 = vector.extract_strided_slice %220 {offsets = [0, 0], sizes = [8, 128], strides = [1, 1]} : vector<8x384xf32> to vector<8x128xf32>
    %223 = vector.extract_strided_slice %220 {offsets = [0, 128], sizes = [8, 128], strides = [1, 1]} : vector<8x384xf32> to vector<8x128xf32>
    %224 = vector.extract_strided_slice %220 {offsets = [0, 256], sizes = [8, 128], strides = [1, 1]} : vector<8x384xf32> to vector<8x128xf32>
    %225 = vector.extract_strided_slice %221 {offsets = [0, 0], sizes = [8, 128], strides = [1, 1]} : vector<8x384xf32> to vector<8x128xf32>
    %226 = vector.extract_strided_slice %221 {offsets = [0, 128], sizes = [8, 128], strides = [1, 1]} : vector<8x384xf32> to vector<8x128xf32>
    %227 = vector.extract_strided_slice %221 {offsets = [0, 256], sizes = [8, 128], strides = [1, 1]} : vector<8x384xf32> to vector<8x128xf32>
    %228 = arith.addf %222, %225 : vector<8x128xf32>
    %229 = arith.negf %228 : vector<8x128xf32>
    %230 = math.exp %229 : vector<8x128xf32>
    %cst_40 = arith.constant 1.000000e+00 : f32
    %231 = vector.broadcast %cst_40 : f32 to vector<8x128xf32>
    %232 = arith.addf %231, %230 : vector<8x128xf32>
    %233 = arith.divf %231, %232 : vector<8x128xf32>
    %234 = arith.addf %223, %226 : vector<8x128xf32>
    %235 = arith.negf %234 : vector<8x128xf32>
    %236 = math.exp %235 : vector<8x128xf32>
    %cst_41 = arith.constant 1.000000e+00 : f32
    %237 = vector.broadcast %cst_41 : f32 to vector<8x128xf32>
    %238 = arith.addf %237, %236 : vector<8x128xf32>
    %239 = arith.divf %237, %238 : vector<8x128xf32>
    %240 = vector.broadcast %8 : vector<1x128xf32> to vector<8x128xf32>
    %241 = arith.addf %227, %240 : vector<8x128xf32>
    %242 = arith.mulf %233, %241 : vector<8x128xf32>
    %243 = arith.addf %224, %242 : vector<8x128xf32>
    %244 = math.tanh %243 : vector<8x128xf32>
    %cst_42 = arith.constant 1.000000e+00 : f32
    %245 = vector.broadcast %cst_42 : f32 to vector<8x128xf32>
    %246 = arith.subf %245, %239 : vector<8x128xf32>
    %247 = arith.mulf %246, %244 : vector<8x128xf32>
    %248 = arith.mulf %239, %219 : vector<8x128xf32>
    %249 = arith.addf %247, %248 : vector<8x128xf32>
    %c0_43 = arith.constant 0 : index
    %c0_44 = arith.constant 0 : index
    %250 = vector.load %arg5[%c0_43, %c0_44] : memref<128x128xf32, #tpu.memory_space<vmem>>, vector<128x128xf32>
    %cst_45 = arith.constant dense<0.000000e+00> : vector<8x128xf32>
    %251 = tpu.matmul %249, %250, %cst_45 {dimension_numbers = #tpu.dot_dimension_numbers<[1], [0], [0], [1], [0, 0, 1, 1], [], []>} : vector<8x128xf32>, vector<128x128xf32>, vector<8x128xf32> -> vector<8x128xf32>
    %c0_46 = arith.constant 0 : index
    %c0_47 = arith.constant 0 : index
    %252 = vector.load %arg6[%c0_46, %c0_47] : memref<1x128xf32, #tpu.memory_space<vmem>>, vector<1x128xf32>
    %253 = vector.broadcast %252 : vector<1x128xf32> to vector<8x128xf32>
    %254 = arith.addf %251, %253 : vector<8x128xf32>
    %c0_48 = arith.constant 0 : index
    %c0_49 = arith.constant 0 : index
    %255 = vector.load %arg7[%c0_48, %c0_49] : memref<8x128xf32, #tpu.memory_space<vmem>>, vector<8x128xf32>
    tpu.vector_store %arg7[%c0_48, %c0_49], %254 {strides = array<i32>} : memref<8x128xf32, #tpu.memory_space<vmem>>, vector<8x128xf32>,
    return
  }
}

</mosaic_0001>

<bundles_post_ra>
// kernel: tpu_custom_call.1
= control target key start
LH: loop header
LB: loop body
LE: loop exit
PB: predicated region body
PF: predicated region fallthrough
CT: control target
= control target key end

     0   :  { %12 = vsyncpa [#allocation3], 0  ;;  %s3615_s0 = inlined_call_operand.hbm [shape: f32[8,8,128], index: 0, kind: input, shape index: {}]   ;;  %s3616_s1 = inlined_call_operand.hbm [shape: f32[128,384], index: 1, kind: input, shape index: {}]   ;;  %s3617_s2 = inlined_call_operand.hbm [shape: f32[128,384], index: 2, kind: input, shape index: {}]   ;;  %s3618_s3 = inlined_call_operand.vmem [shape: f32[1,384], index: 3, kind: input, shape index: {}]   ;;  %s3619_s4 = inlined_call_operand.vmem [shape: f32[1,128], index: 4, kind: input, shape index: {}]   ;;  %s3620_s5 = inlined_call_operand.hbm [shape: f32[128,128], index: 5, kind: input, shape index: {}]   ;;  %s3621_s6 = inlined_call_operand.vmem [shape: f32[1,128], index: 6, kind: input, shape index: {}]   ;;  %s3622_s7 = inlined_call_operand.hbm [shape: f32[8,128], index: 7, kind: output, shape index: {}]  }
   0x1   :  { %13 = vsyncpa [#allocation6], 0 }
   0x2   :  { %14 = vsyncpa [#allocation9], 0 }
   0x3   :  { %15 = vsyncpa [#allocation4], 0  ;;  %s2645_s24 = smov [#allocation5]  }
   0x4   :  { %s33_s25 = sshll.u32 %s2645_s24, 4  ;;  %s34_s25 = int_to_ptr.vmem [resolvable:$true] %s33_s25 }
   0x5   :  { %s2545_s26 = scalar_lea.vmem %s34_s25, 6144  ;;  %p2550_p1 = scmp.lt.s32.totalorder %s34_s25, %s34_s25 }
   0x6   :  { %p2546_p0 = scmp.ne.s32.totalorder %s34_s25, %s2545_s26  ;;  %p2551_p2 = scmp.lt.s32.totalorder %s2545_s26, %s2545_s26 }
   0x8   :  { %p2552_p3 = por %p2551_p2, %p2550_p1 }
   0xa   :  { %p2553_p4 = pnand %p2552_p3, %p2546_p0 }
   0xc   :  { %2556 = shalt.err (!%p2553_p4)
}
   0xd   :  { %s2646_s27 = smov 384   ;;  %s2647_s28 = smov 24  }
   0xe   :  { %39 = dma.hbm_to_vmem [thread:$0]  %s3616_s1, 6144, %s34_s25, [#allocation6], %s2646_s27, %s2646_s27, %s2647_s28  }
   0xf   :  { %s2648_s8 = smov [#allocation2]  }
  0x10   :  { %s21_s9 = sshll.u32 %s2648_s8, 4  ;;  %s22_s9 = int_to_ptr.vmem [resolvable:$true] %s21_s9 }
  0x11   :  { %s2565_s10 = scalar_lea.vmem %s22_s9, 1024  ;;  %p2570_p6 = scmp.lt.s32.totalorder %s22_s9, %s22_s9 }
  0x12   :  { %p2566_p5 = scmp.ne.s32.totalorder %s22_s9, %s2565_s10  ;;  %p2571_p7 = scmp.lt.s32.totalorder %s2565_s10, %s2565_s10 }
  0x14   :  { %p2572_p8 = por %p2571_p7, %p2570_p6 }
  0x16   :  { %p2573_p9 = pnand %p2572_p8, %p2566_p5 }
  0x18   :  { %2576 = shalt.err (!%p2573_p9)
}
  0x19   :  { %s2649_s11 = smov 128   ;;  %s2650_s12 = smov 8  }
  0x1a   :  { %27 = dma.hbm_to_vmem [thread:$0]  %s3615_s0, 1024, %s22_s9, [#allocation3], %s2649_s11, %s2649_s11, %s2650_s12  }
  0x1b   :  { %s2651_s15 = smov [#allocation7]   ;;  %s2652_s17 = smov [#allocation8]  }
  0x1c   :  { %s45_s16 = sshll.u32 %s2651_s15, 4  ;;  %s61_s1 = sshll.u32 %s2652_s17, 4  ;;  %s46_s16 = int_to_ptr.vmem [resolvable:$true] %s45_s16  ;;  %s62_s1 = int_to_ptr.vmem [resolvable:$true] %s61_s1 }
  0x1d   :  { %s2585_s18 = scalar_lea.vmem %s46_s16, 6144  ;;  %p2590_p11 = scmp.lt.s32.totalorder %s46_s16, %s46_s16 }
  0x1e   :  { %p2586_p10 = scmp.ne.s32.totalorder %s46_s16, %s2585_s18  ;;  %p2591_p12 = scmp.lt.s32.totalorder %s2585_s18, %s2585_s18 }
  0x20   :  { %p2592_p13 = por %p2591_p12, %p2590_p11 }
  0x22   :  { %p2593_p0 = pnand %p2592_p13, %p2586_p10 }
  0x24   :  { %2596 = shalt.err (!%p2593_p0)
}
  0x25   :  { %51 = dma.hbm_to_vmem [thread:$0]  %s3617_s2, 6144, %s46_s16, [#allocation6], %s2646_s27, %s2646_s27, %s2647_s28  }
  0x26   :  { %s2605_s0 = scalar_lea.vmem %s62_s1, 2048  ;;  %p2610_p2 = scmp.lt.s32.totalorder %s62_s1, %s62_s1 }
  0x27   :  { %p2606_p1 = scmp.ne.s32.totalorder %s62_s1, %s2605_s0  ;;  %p2611_p3 = scmp.lt.s32.totalorder %s2605_s0, %s2605_s0 }
  0x29   :  { %p2612_p4 = por %p2611_p3, %p2610_p2 }
  0x2b   :  { %p2613_p5 = pnand %p2612_p4, %p2606_p1 }
  0x2d   :  { %2616 = shalt.err (!%p2613_p5)
}
  0x2e   :  { %67 = dma.hbm_to_vmem [thread:$0]  %s3620_s5, 2048, %s62_s1, [#allocation9], %s2649_s11, %s2649_s11, %s2650_s12  }
  0x2f   :  { %2637 = dma.done.wait [#allocation3], 1024  }
  0x30   :  { %2638 = vsyncadd [#allocation3], 4294966272 }
  0x31   :  { %2639 = dma.done.wait [#allocation6], 12288  }
  0x32   :  { %2640 = vsyncadd [#allocation6], 4294955008 }
  0x33   :  { %2641 = dma.done.wait [#allocation9], 2048  }
  0x34   :  { %2642 = vsyncadd [#allocation9], 4294965248  ;;  %v3623_v0 = vmov 0.0   ;;  %v136_v1 = vld [vmem:[#allocation5 + $0x170] sm:$0xff]  ;;  %v135_v2 = vld [vmem:[#allocation5 + $0x168] sm:$0xff]  ;;  %vm2654_vm0 = vmmov 0  }
  0x35   :  { %219 = vmatprep.mubr.f32.mxu0 %v3623_v0  ;;  %v133_v3 = vld [vmem:[#allocation5 + $0x158] sm:$0xff]  ;;  %155 = vmatprep.subr.mxu0 %v136_v1  ;;  %v132_v4 = vld [vmem:[#allocation5 + $0x150] sm:$0xff]  ;;  %v130_v5 = vld [vmem:[#allocation5 + $0x140] sm:$0xff]  ;;  %s2655_s27 = smov [#allocation10]  }
  0x36   :  { %156 = vmatpush1.msra.mxu0 %v135_v2  ;;  %v129_v6 = vld [vmem:[#allocation5 + $0x138] sm:$0xff]  ;;  %v127_v7 = vld [vmem:[#allocation5 + $0x128] sm:$0xff]  ;;  %v126_v8 = vld [vmem:[#allocation5 + $0x120] sm:$0xff]  ;;  %s1832_s28 = sshll.u32 %s2655_s27, 4  ;;  %s1833_s28 = int_to_ptr.vmem [resolvable:$true] %s1832_s28 }
  0x37   :  { %157 = vmatprep.subr.mxu0 %v133_v3  ;;  %v124_v9 = vld [vmem:[#allocation5 + $0x110] sm:$0xff]  ;;  %v123_v10 = vld [vmem:[#allocation5 + $0x108] sm:$0xff]  ;;  %v121_v11 = vld [vmem:[#allocation5 + $0xf8] sm:$0xff]  ;;  %s2617_s29 = scalar_lea.vmem %s1833_s28, 128  ;;  %p2622_p7 = scmp.lt.s32.totalorder %s1833_s28, %s1833_s28 }
  0x38   :  { %158 = vmatpush1.msra.mxu0 %v132_v4  ;;  %v120_v12 = vld [vmem:[#allocation5 + $0xf0] sm:$0xff]  ;;  %v118_v13 = vld [vmem:[#allocation5 + $0xe0] sm:$0xff]  ;;  %v137_v14 = vld [vmem:[#allocation5 + $0x178] sm:$0xff]  ;;  %p2618_p6 = scmp.ne.s32.totalorder %s1833_s28, %s2617_s29  ;;  %p2623_p8 = scmp.lt.s32.totalorder %s2617_s29, %s2617_s29 }
  0x39   :  { %159 = vmatprep.subr.mxu0 %v130_v5  ;;  %v117_v15 = vld [vmem:[#allocation5 + $0xd8] sm:$0xff]  ;;  %2038 = vmatprep.subr.mxu1 %v137_v14  ;;  %v134_v16 = vld [vmem:[#allocation5 + $0x160] sm:$0xff]  ;;  %v115_v17 = vld [vmem:[#allocation5 + $0xc8] sm:$0xff] }
  0x3a   :  { %160 = vmatpush1.msra.mxu0 %v129_v6  ;;  %2039 = vmatpush3.msra.mxu1 %v137_v14  ;;  %v131_v18 = vld [vmem:[#allocation5 + $0x148] sm:$0xff]  ;;  %v114_v19 = vld [vmem:[#allocation5 + $0xc0] sm:$0xff]  ;;  %v112_v20 = vld [vmem:[#allocation5 + $0xb0] sm:$0xff]  ;;  %p2624_p9 = por %p2623_p8, %p2622_p7 }
  0x3b   :  { %161 = vmatprep.subr.mxu0 %v127_v7  ;;  %2040 = vmatprep.subr.mxu1 %v134_v16  ;;  %v128_v21 = vld [vmem:[#allocation5 + $0x130] sm:$0xff]  ;;  %v111_v22 = vld [vmem:[#allocation5 + $0xa8] sm:$0xff]  ;;  %v109_v23 = vld [vmem:[#allocation5 + $0x98] sm:$0xff] }
  0x3c   :  { %162 = vmatpush1.msra.mxu0 %v126_v8  ;;  %2041 = vmatpush3.msra.mxu1 %v134_v16  ;;  %v125_v24 = vld [vmem:[#allocation5 + $0x118] sm:$0xff]  ;;  %v108_v25 = vld [vmem:[#allocation5 + $0x90] sm:$0xff]  ;;  %v106_v26 = vld [vmem:[#allocation5 + $0x80] sm:$0xff]  ;;  %p2625_p10 = pnand %p2624_p9, %p2618_p6 }
  0x3d   :  { %163 = vmatprep.subr.mxu0 %v124_v9  ;;  %2042 = vmatprep.subr.mxu1 %v131_v18  ;;  %v122_v27 = vld [vmem:[#allocation5 + $0x100] sm:$0xff]  ;;  %v105_v28 = vld [vmem:[#allocation5 + $0x78] sm:$0xff]  ;;  %v103_v29 = vld [vmem:[#allocation5 + $0x68] sm:$0xff] }
  0x3e   :  { %164 = vmatpush1.msra.mxu0 %v123_v10  ;;  %2043 = vmatpush3.msra.mxu1 %v131_v18  ;;  %v119_v30 = vld [vmem:[#allocation5 + $0xe8] sm:$0xff]  ;;  %v102_v31 = vld [vmem:[#allocation5 + $0x60] sm:$0xff]  ;;  %v100_v32 = vld [vmem:[#allocation5 + $0x50] sm:$0xff] }
  0x3f   :  { %165 = vmatprep.subr.mxu0 %v121_v11  ;;  %2044 = vmatprep.subr.mxu1 %v128_v21  ;;  %v116_v33 = vld [vmem:[#allocation5 + $0xd0] sm:$0xff]  ;;  %v99_v34 = vld [vmem:[#allocation5 + $0x48] sm:$0xff]  ;;  %v97_v35 = vld [vmem:[#allocation5 + $0x38] sm:$0xff] }
  0x40   :  { %166 = vmatpush1.msra.mxu0 %v120_v12  ;;  %2045 = vmatpush3.msra.mxu1 %v128_v21  ;;  %v113_v36 = vld [vmem:[#allocation5 + $0xb8] sm:$0xff]  ;;  %v96_v37 = vld [vmem:[#allocation5 + $0x30] sm:$0xff]  ;;  %v94_v38 = vld [vmem:[#allocation5 + $0x20] sm:$0xff] }
  0x41   :  { %167 = vmatprep.subr.mxu0 %v118_v13  ;;  %2046 = vmatprep.subr.mxu1 %v125_v24  ;;  %v110_v39 = vld [vmem:[#allocation5 + $0xa0] sm:$0xff]  ;;  %v93_v40 = vld [vmem:[#allocation5 + $0x18] sm:$0xff]  ;;  %v91_v41 = vld [vmem:[#allocation5 + $0x8] sm:$0xff] }
  0x42   :  { %168 = vmatpush1.msra.mxu0 %v117_v15  ;;  %2047 = vmatpush3.msra.mxu1 %v125_v24  ;;  %v107_v42 = vld [vmem:[#allocation5 + $0x88] sm:$0xff]  ;;  %v90_v43 = vld [vmem:[#allocation5] sm:$0xff]  ;;  %v2717_v45 = vld [vmem:[#allocation7 + $0x170] sm:$0xff] }
  0x43   :  { %169 = vmatprep.subr.mxu0 %v115_v17  ;;  %2048 = vmatprep.subr.mxu1 %v122_v27  ;;  %v2715_v44 = vld [vmem:[#allocation2] sm:$0xff]  ;;  %3641 = vst [vmem:[#allocation15_spill] sm:$0xff] %v2717_v45  ;;  %v2719_v46 = vld [vmem:[#allocation7 + $0x168] sm:$0xff]  ;;  %v2721_v47 = vld [vmem:[#allocation7 + $0x158] sm:$0xff] }
  0x44   :  { %170 = vmatpush1.msra.mxu0 %v114_v19  ;;  %2049 = vmatpush3.msra.mxu1 %v122_v27  ;;  %v104_v48 = vld [vmem:[#allocation5 + $0x70] sm:$0xff]  ;;  %v2729_v50 = vld [vmem:[#allocation2 + $0x8] sm:$0xff]  ;;  %v2731_v51 = vld [vmem:[#allocation7 + $0x140] sm:$0xff] }
  0x45   :  { %171 = vmatprep.subr.mxu0 %v112_v20  ;;  %2050 = vmatprep.subr.mxu1 %v119_v30  ;;  %v2725_v49 = vld [vmem:[#allocation7 + $0x150] sm:$0xff]  ;;  %v2734_v52 = vld [vmem:[#allocation7 + $0x138] sm:$0xff]  ;;  %v2737_v53 = vld [vmem:[#allocation7 + $0x128] sm:$0xff] }
  0x46   :  { %172 = vmatpush1.msra.mxu0 %v111_v22  ;;  %2051 = vmatpush3.msra.mxu1 %v119_v30  ;;  %v101_v54 = vld [vmem:[#allocation5 + $0x58] sm:$0xff]  ;;  %v2741_v55 = vld [vmem:[#allocation7 + $0x120] sm:$0xff]  ;;  %v2745_v56 = vld [vmem:[#allocation2 + $0x10] sm:$0xff] }
  0x47   :  { %173 = vmatprep.subr.mxu0 %v109_v23  ;;  %2052 = vmatprep.subr.mxu1 %v116_v33  ;;  %v2747_v57 = vld [vmem:[#allocation7 + $0x110] sm:$0xff]  ;;  %v2750_v58 = vld [vmem:[#allocation7 + $0x108] sm:$0xff]  ;;  %v2753_v59 = vld [vmem:[#allocation7 + $0xf8] sm:$0xff] }
  0x48   :  { %174 = vmatpush1.msra.mxu0 %v108_v25  ;;  %2053 = vmatpush3.msra.mxu1 %v116_v33  ;;  %v98_v60 = vld [vmem:[#allocation5 + $0x40] sm:$0xff]  ;;  %v2757_v61 = vld [vmem:[#allocation7 + $0xf0] sm:$0xff]  ;;  %v2761_v62 = vld [vmem:[#allocation2 + $0x18] sm:$0xff] }
  0x49   :  { %175 = vmatprep.subr.mxu0 %v106_v26  ;;  %2054 = vmatprep.subr.mxu1 %v113_v36  ;;  %v2763_v63 = vld [vmem:[#allocation7 + $0xe0] sm:$0xff]  ;;  %v2766_v1 = vld [vmem:[#allocation7 + $0xd8] sm:$0xff]  ;;  %v2769_v2 = vld [vmem:[#allocation7 + $0xc8] sm:$0xff] }
  0x4a   :  { %176 = vmatpush1.msra.mxu0 %v105_v28  ;;  %2055 = vmatpush3.msra.mxu1 %v113_v36  ;;  %v95_v3 = vld [vmem:[#allocation5 + $0x28] sm:$0xff]  ;;  %v2773_v4 = vld [vmem:[#allocation7 + $0xc0] sm:$0xff]  ;;  %v2779_v6 = vld [vmem:[#allocation7 + $0xb0] sm:$0xff] }
  0x4b   :  { %177 = vmatprep.subr.mxu0 %v103_v29  ;;  %2056 = vmatprep.subr.mxu1 %v110_v39  ;;  %v2777_v5 = vld [vmem:[#allocation2 + $0x20] sm:$0xff]  ;;  %v2782_v7 = vld [vmem:[#allocation7 + $0xa8] sm:$0xff]  ;;  %v2785_v8 = vld [vmem:[#allocation7 + $0x98] sm:$0xff] }
  0x4c   :  { %178 = vmatpush1.msra.mxu0 %v102_v31  ;;  %2057 = vmatpush3.msra.mxu1 %v110_v39  ;;  %v92_v9 = vld [vmem:[#allocation5 + $0x10] sm:$0xff]  ;;  %v87_v11 = vld [vmem:[#allocation2 + $0x28] sm:$0xff]  ;;  %v2793_v12 = vld [vmem:[#allocation7 + $0x80] sm:$0xff] }
  0x4d   :  { %179 = vmatprep.subr.mxu0 %v100_v32  ;;  %2058 = vmatprep.subr.mxu1 %v107_v42  ;;  %v2789_v10 = vld [vmem:[#allocation7 + $0x90] sm:$0xff]  ;;  %v2796_v13 = vld [vmem:[#allocation7 + $0x78] sm:$0xff]  ;;  %v2799_v14 = vld [vmem:[#allocation7 + $0x68] sm:$0xff] }
  0x4e   :  { %180 = vmatpush1.msra.mxu0 %v99_v34  ;;  %2059 = vmatpush3.msra.mxu1 %v107_v42  ;;  %v2802_v15 = vld [vmem:[#allocation7 + $0x60] sm:$0xff]  ;;  %v88_v16 = vld [vmem:[#allocation2 + $0x30] sm:$0xff]  ;;  %v2809_v18 = vld [vmem:[#allocation7 + $0x48] sm:$0xff]  ;;  %v140_v42 = vlaneseq }
  0x4f   :  { %181 = vmatprep.subr.mxu0 %v97_v35  ;;  %2060 = vmatprep.subr.mxu1 %v104_v48  ;;  %v2806_v17 = vld [vmem:[#allocation7 + $0x50] sm:$0xff]  ;;  %v2813_v19 = vld [vmem:[#allocation7 + $0x38] sm:$0xff]  ;;  %v2823_v23 = vld [vmem:[#allocation7 + $0x20] sm:$0xff] }
  0x50   :  { %182 = vmatpush1.msra.mxu0 %v96_v37  ;;  %2061 = vmatpush3.msra.mxu1 %v104_v48  ;;  %v2817_v20 = vld [vmem:[#allocation7 + $0x30] sm:$0xff]  ;;  %v2819_v21 = vld [vmem:[#allocation7 + $0x178] sm:$0xff]  ;;  %v2830_v25 = vld [vmem:[#allocation7 + $0x8] sm:$0xff] }
  0x51   :  { %183 = vmatprep.subr.mxu0 %v94_v38  ;;  %2062 = vmatprep.subr.mxu1 %v101_v54  ;;  %v89_v22 = vld [vmem:[#allocation2 + $0x38] sm:$0xff]  ;;  %3643 = vst [vmem:[#allocation17_spill] sm:$0xff] %v2830_v25  ;;  %v2834_v26 = vld [vmem:[#allocation7] sm:$0xff]  ;;  %v2842_v28 = vld [vmem:[#allocation7 + $0x148] sm:$0xff] }
  0x52   :  { %184 = vmatpush1.msra.mxu0 %v93_v40  ;;  %2063 = vmatpush3.msra.mxu1 %v101_v54  ;;  %v2826_v24 = vld [vmem:[#allocation7 + $0x18] sm:$0xff]  ;;  %3644 = vst [vmem:[#allocation18_spill] sm:$0xff] %v2834_v26  ;;  %v2836_v27 = vld [vmem:[#allocation7 + $0x160] sm:$0xff]  ;;  %v2848_v29 = vld [vmem:[#allocation7 + $0x130] sm:$0xff] }
  0x53   :  { %185 = vmatprep.subr.mxu0 %v91_v41  ;;  %2064 = vmatprep.subr.mxu1 %v98_v60  ;;  %3642 = vst [vmem:[#allocation16_spill] sm:$0xff] %v2826_v24  ;;  %v2853_v30 = vld [vmem:[#allocation7 + $0x118] sm:$0xff]  ;;  %v2859_v31 = vld [vmem:[#allocation7 + $0x100] sm:$0xff]  ;;  %v2865_v32 = vld [vmem:[#allocation7 + $0xe8] sm:$0xff] }
  0x54   :  { %186 = vmatpush1.msra.mxu0 %v90_v43  ;;  %2065 = vmatpush3.msra.mxu1 %v98_v60  ;;  %v2869_v33 = vld [vmem:[#allocation7 + $0xd0] sm:$0xff]  ;;  %v2875_v34 = vld [vmem:[#allocation7 + $0xb8] sm:$0xff]  ;;  %v2881_v35 = vld [vmem:[#allocation7 + $0xa0] sm:$0xff]  ;;  %v141_v43 = vshrl.u32 %v140_v42, 7 }
  0x55   :  { %220 = vmatmul.mubr.f32.vlgmr.msra.gmra.mxu0 %v2715_v44  ;;  %422 = vmatprep.subr.mxu0 %v2717_v45  ;;  %v2887_v36 = vld [vmem:[#allocation7 + $0x88] sm:$0xff]  ;;  %v2893_v37 = vld [vmem:[#allocation7 + $0x70] sm:$0xff]  ;;  %v2899_v38 = vld [vmem:[#allocation7 + $0x58] sm:$0xff] }
  0x56   :  { %423 = vmatpush1.msra.mxu0 %v2719_v46  ;;  %225 = vmatprep.mubr.f32.mxu0 %v3623_v0  ;;  %v2905_v39 = vld [vmem:[#allocation7 + $0x40] sm:$0xff]  ;;  %v2911_v40 = vld [vmem:[#allocation7 + $0x28] sm:$0xff]  ;;  %v2917_v41 = vld [vmem:[#allocation7 + $0x10] sm:$0xff]  ;;  %v146_v54 = vsub.s32 1, %v141_v43 }
  0x57   :  { %424 = vmatprep.subr.mxu0 %v2721_v47  ;;  %2066 = vmatprep.subr.mxu1 %v95_v3  ;;  %3645 = vst [vmem:[#allocation19_spill] sm:$0xff] %v2911_v40  ;;  %3646 = vst [vmem:[#allocation20_spill] sm:$0xff] %v2917_v41  ;;  %v138_v48 = vld [vmem:[%s3618_s3] sm:$0x7] }
  0x58   :  { %425 = vmatpush1.msra.mxu0 %v2725_v49  ;;  %2067 = vmatpush3.msra.mxu1 %v95_v3  ;;  %v147_v3 = vrot.slane %v138_v48, %v146_v54 }
  0x59   :  { %226 = vmatmul.mubr.f32.gmra.mxu0 %v2729_v50  ;;  %426 = vmatprep.subr.mxu0 %v2731_v51 }
  0x5a   :  { %427 = vmatpush1.msra.mxu0 %v2734_v52  ;;  %231 = vmatprep.mubr.f32.mxu0 %v3623_v0 }
  0x5b   :  { %428 = vmatprep.subr.mxu0 %v2737_v53  ;;  %2068 = vmatprep.subr.mxu1 %v92_v9 }
  0x5c   :  { %429 = vmatpush1.msra.mxu0 %v2741_v55  ;;  %2069 = vmatpush3.msra.mxu1 %v92_v9 }
  0x5d   :  { %232 = vmatmul.mubr.f32.gmra.mxu0 %v2745_v56  ;;  %430 = vmatprep.subr.mxu0 %v2747_v57 }
  0x5e   :  { %431 = vmatpush1.msra.mxu0 %v2750_v58  ;;  %237 = vmatprep.mubr.f32.mxu0 %v3623_v0 }
  0x5f   :  { %432 = vmatprep.subr.mxu0 %v2753_v59  ;;  %2070 = vmatprep.mubr.f32.mxu1 %v2715_v44  ;;  %v142_v44 = vsub.s32 0, %v141_v43 }
  0x60   :  { %433 = vmatpush1.msra.mxu0 %v2757_v61  ;;  %2082 = vmatprep.subr.mxu1 %v3623_v0 }
  0x61   :  { %238 = vmatmul.mubr.f32.gmra.mxu0 %v2761_v62  ;;  %434 = vmatprep.subr.mxu0 %v2763_v63  ;;  %v143_v60 = vrot.slane %v138_v48, %v142_v44 }
  0x62   :  { %435 = vmatpush1.msra.mxu0 %v2766_v1  ;;  %243 = vmatprep.mubr.f32.mxu0 %v3623_v0 }
  0x63   :  { %436 = vmatprep.subr.mxu0 %v2769_v2  ;;  %2071 = vmatmul.mubr.f32.vlgmr.msra.gmra.mxu1 %v2729_v50 }
  0x64   :  { %437 = vmatpush1.msra.mxu0 %v2773_v4  ;;  %2083 = vmatpush3.msra.mxu1 %v2819_v21 }
  0x65   :  { %244 = vmatmul.mubr.f32.gmra.mxu0 %v2777_v5  ;;  %438 = vmatprep.subr.mxu0 %v2779_v6 }
  0x66   :  { %439 = vmatpush1.msra.mxu0 %v2782_v7  ;;  %249 = vmatprep.mubr.f32.mxu0 %v3623_v0 }
  0x67   :  { %440 = vmatprep.subr.mxu0 %v2785_v8  ;;  %2084 = vmatprep.subr.mxu1 %v3623_v0 }
  0x68   :  { %441 = vmatpush1.msra.mxu0 %v2789_v10  ;;  %2085 = vmatpush3.msra.mxu1 %v2836_v27 }
  0x69   :  { %250 = vmatmul.mubr.f32.gmra.mxu0 %v87_v11  ;;  %442 = vmatprep.subr.mxu0 %v2793_v12 }
  0x6a   :  { %443 = vmatpush1.msra.mxu0 %v2796_v13  ;;  %255 = vmatprep.mubr.f32.mxu0 %v3623_v0 }
  0x6b   :  { %444 = vmatprep.subr.mxu0 %v2799_v14  ;;  %2086 = vmatprep.subr.mxu1 %v3623_v0 }
  0x6c   :  { %445 = vmatpush1.msra.mxu0 %v2802_v15  ;;  %2087 = vmatpush3.msra.mxu1 %v2842_v28 }
  0x6d   :  { %256 = vmatmul.mubr.f32.gmra.mxu0 %v88_v16  ;;  %446 = vmatprep.subr.mxu0 %v2806_v17 }
  0x6e   :  { %447 = vmatpush1.msra.mxu0 %v2809_v18  ;;  %261 = vmatprep.mubr.f32.mxu0 %v3623_v0 }
  0x6f   :  { %448 = vmatprep.subr.mxu0 %v2813_v19  ;;  %2073 = vmatprep.mubr.f32.mxu1 %v2745_v56 }
  0x70   :  { %449 = vmatpush1.msra.mxu0 %v2817_v20  ;;  %2088 = vmatprep.subr.mxu1 %v3623_v0 }
  0x71   :  { %262 = vmatmul.mubr.f32.gmra.mxu0 %v89_v22  ;;  %450 = vmatprep.subr.mxu0 %v2823_v23 }
  0x72   :  { %451 = vmatpush1.msra.mxu0 %v2826_v24  ;;  %486 = vmatprep.mubr.f32.mxu0 %v3623_v0 }
  0x73   :  { %452 = vmatprep.subr.mxu0 %v2830_v25  ;;  %2074 = vmatmul.mubr.f32.gmra.mxu1 %v2761_v62 }
  0x74   :  { %453 = vmatpush1.msra.mxu0 %v2834_v26  ;;  %2089 = vmatpush3.msra.mxu1 %v2848_v29 }
  0x75   :  { %487 = vmatmul.mubr.f32.vlgmr.msra.gmra.mxu0 %v3623_v0  ;;  %2076 = vmatprep.mubr.f32.mxu1 %v2777_v5 }
  0x76   :  { %2090 = vmatprep.subr.mxu1 %v3623_v0  ;;  %591 = vmatprep.subr.mxu0 %v2717_v45 }
  0x77   :  { %2091 = vmatpush3.msra.mxu1 %v2853_v30  ;;  %592 = vmatpush1.msra.mxu0 %v2719_v46 }
  0x78   :  { %2092 = vmatprep.subr.mxu1 %v3623_v0  ;;  %2077 = vmatmul.mubr.f32.gmra.mxu1 %v87_v11 }
  0x79   :  { %2093 = vmatpush3.msra.mxu1 %v2859_v31  ;;  %2079 = vmatprep.mubr.f32.mxu1 %v88_v16 }
  0x7a   :  { %2094 = vmatprep.subr.mxu1 %v3623_v0  ;;  %593 = vmatprep.subr.mxu0 %v2721_v47 }
  0x7b   :  { %2095 = vmatpush3.msra.mxu1 %v2865_v32  ;;  %594 = vmatpush1.msra.mxu0 %v2725_v49 }
  0x7c   :  { %2096 = vmatprep.subr.mxu1 %v3623_v0  ;;  %2080 = vmatmul.mubr.f32.gmra.mxu1 %v89_v22 }
  0x7d   :  { %2097 = vmatpush3.msra.mxu1 %v2869_v33  ;;  %2114 = vmatprep.mubr.msk.f32.mxu1 %vm2654_vm0, %v3623_v0 }
  0x7e   :  { %2098 = vmatprep.subr.mxu1 %v3623_v0  ;;  %595 = vmatprep.subr.mxu0 %v2731_v51 }
  0x7f   :  { %2099 = vmatpush3.msra.mxu1 %v2875_v34  ;;  %596 = vmatpush1.msra.mxu0 %v2734_v52 }
  0x80   :  { %2100 = vmatprep.subr.mxu1 %v3623_v0  ;;  %597 = vmatprep.subr.mxu0 %v2737_v53 }
  0x81   :  { %2101 = vmatpush3.msra.mxu1 %v2881_v35  ;;  %598 = vmatpush1.msra.mxu0 %v2741_v55 }
  0x82   :  { %2102 = vmatprep.subr.mxu1 %v3623_v0  ;;  %599 = vmatprep.subr.mxu0 %v2747_v57 }
  0x83   :  { %2103 = vmatpush3.msra.mxu1 %v2887_v36  ;;  %600 = vmatpush1.msra.mxu0 %v2750_v58 }
  0x84   :  { %2104 = vmatprep.subr.mxu1 %v3623_v0  ;;  %601 = vmatprep.subr.mxu0 %v2753_v59 }
  0x85   :  { %2105 = vmatpush3.msra.mxu1 %v2893_v37  ;;  %602 = vmatpush1.msra.mxu0 %v2757_v61 }
  0x86   :  { %2106 = vmatprep.subr.mxu1 %v3623_v0  ;;  %603 = vmatprep.subr.mxu0 %v2763_v63 }
  0x87   :  { %2107 = vmatpush3.msra.mxu1 %v2899_v38  ;;  %604 = vmatpush1.msra.mxu0 %v2766_v1 }
  0x88   :  { %2108 = vmatprep.subr.mxu1 %v3623_v0  ;;  %605 = vmatprep.subr.mxu0 %v2769_v2 }
  0x89   :  { %2109 = vmatpush3.msra.mxu1 %v2905_v39  ;;  %606 = vmatpush1.msra.mxu0 %v2773_v4 }
  0x8a   :  { %2110 = vmatprep.subr.mxu1 %v3623_v0  ;;  %607 = vmatprep.subr.mxu0 %v2779_v6 }
  0x8b   :  { %2111 = vmatpush3.msra.mxu1 %v2911_v40  ;;  %608 = vmatpush1.msra.mxu0 %v2782_v7 }
  0x8c   :  { %2112 = vmatprep.subr.mxu1 %v3623_v0  ;;  %609 = vmatprep.subr.mxu0 %v2785_v8 }
  0x8d   :  { %2113 = vmatpush3.msra.mxu1 %v2917_v41  ;;  %610 = vmatpush1.msra.mxu0 %v2789_v10 }
  0x8e   :  { %2115 = vmatmul.mubr.f32.vlgmr.msra.gmra.mxu1 %v3623_v0  ;;  %2117 = vmatprep.subr.mxu1 %v3623_v0 }
  0x8f   :  { %2118 = vmatpush3.msra.mxu1 %v2819_v21  ;;  %611 = vmatprep.subr.mxu0 %v2793_v12 }
  0x90   :  { %2119 = vmatprep.subr.mxu1 %v3623_v0  ;;  %612 = vmatpush1.msra.mxu0 %v2796_v13 }
  0x91   :  { %2120 = vmatpush3.msra.mxu1 %v2836_v27  ;;  %613 = vmatprep.subr.mxu0 %v2799_v14 }
  0x92   :  { %2121 = vmatprep.subr.mxu1 %v3623_v0  ;;  %614 = vmatpush1.msra.mxu0 %v2802_v15 }
  0x93   :  { %2122 = vmatpush3.msra.mxu1 %v2842_v28  ;;  %615 = vmatprep.subr.mxu0 %v2806_v17 }
  0x94   :  { %2123 = vmatprep.subr.mxu1 %v3623_v0  ;;  %616 = vmatpush1.msra.mxu0 %v2809_v18 }
  0x95   :  { %2124 = vmatpush3.msra.mxu1 %v2848_v29  ;;  %617 = vmatprep.subr.mxu0 %v2813_v19 }
  0x96   :  { %2125 = vmatprep.subr.mxu1 %v3623_v0  ;;  %618 = vmatpush1.msra.mxu0 %v2817_v20 }
  0x97   :  { %2126 = vmatpush3.msra.mxu1 %v2853_v30  ;;  %619 = vmatprep.subr.mxu0 %v2823_v23 }
  0x98   :  { %2127 = vmatprep.subr.mxu1 %v3623_v0  ;;  %620 = vmatpush1.msra.mxu0 %v2826_v24 }
  0x99   :  { %2128 = vmatpush3.msra.mxu1 %v2859_v31  ;;  %621 = vmatprep.subr.mxu0 %v2830_v25 }
  0x9a   :  { %2129 = vmatprep.subr.mxu1 %v3623_v0  ;;  %622 = vmatpush1.msra.mxu0 %v2834_v26 }
  0x9b   :  { %2130 = vmatpush3.msra.mxu1 %v2865_v32  ;;  %655 = vmatprep.mubr.f32.mxu0 %v3623_v0 }
  0x9c   :  { %2131 = vmatprep.subr.mxu1 %v3623_v0  ;;  %2149 = vmatprep.mubr.msk.f32.mxu1 %vm2654_vm0, %v3623_v0 }
  0x9d   :  { %2132 = vmatpush3.msra.mxu1 %v2869_v33  ;;  %754 = vmatprep.subr.mxu0 %v2717_v45 }
  0x9e   :  { %2133 = vmatprep.subr.mxu1 %v3623_v0 }
  0x9f   :  { %2134 = vmatpush3.msra.mxu1 %v2875_v34 }
  0xa0   :  { %2135 = vmatprep.subr.mxu1 %v3623_v0 }
  0xa1   :  { %2136 = vmatpush3.msra.mxu1 %v2881_v35 }
  0xa2   :  { %2137 = vmatprep.subr.mxu1 %v3623_v0 }
  0xa3   :  { %2138 = vmatpush3.msra.mxu1 %v2887_v36 }
  0xa4   :  { %2139 = vmatprep.subr.mxu1 %v3623_v0 }
  0xa5   :  { %2140 = vmatpush3.msra.mxu1 %v2893_v37 }
  0xa6   :  { %2141 = vmatprep.subr.mxu1 %v3623_v0 }
  0xa7   :  { %2142 = vmatpush3.msra.mxu1 %v2899_v38 }
  0xa8   :  { %2143 = vmatprep.subr.mxu1 %v3623_v0 }
  0xa9   :  { %2144 = vmatpush3.msra.mxu1 %v2905_v39 }
  0xaa   :  { %2145 = vmatprep.subr.mxu1 %v3623_v0 }
  0xab   :  { %2146 = vmatpush3.msra.mxu1 %v2911_v40 }
  0xac   :  { %2147 = vmatprep.subr.mxu1 %v3623_v0 }
  0xad   :  { %2148 = vmatpush3.msra.mxu1 %v2917_v41 }
  0xae   :  { %2152 = vmatprep.subr.mxu1 %v3623_v0 }
 0x115   :  { %v221_v50 = vpop.f32.mrf.mxu0 }
 0x117   :  { %v223_v56 = vpop.f32.mrf.mxu0 }
 0x119   :  { %v227_v62 = vpop.f32.mrf.mxu0 }
 0x11a   :  { %v2979_v5 = vadd.f32 %v227_v62, %v143_v60 }
 0x11b   :  { %v229_v9 = vpop.f32.mrf.mxu0 }
 0x11c   :  { %3647 = vst [vmem:[#allocation21_spill] sm:$0xff] %v2979_v5  ;;  %v2981_v11 = vadd.f32 %v229_v9, %v147_v3  ;;  %v150_v9 = vsub.s32 2, %v141_v43 }
 0x11d   :  { %v233_v16 = vpop.f32.mrf.mxu0 }
 0x11e   :  { %3648 = vst [vmem:[#allocation22_spill] sm:$0xff] %v2981_v11  ;;  %v2983_v22 = vadd.f32 %v233_v16, %v143_v60 }
 0x11f   :  { %v235_v42 = vpop.f32.mrf.mxu0 }
 0x120   :  { %3649 = vst [vmem:[#allocation23_spill] sm:$0xff] %v2983_v22  ;;  %v2985_v0 = vadd.f32 %v235_v42, %v147_v3  ;;  %v151_v42 = vrot.slane %v138_v48, %v150_v9 }
 0x121   :  { %v239_v45 = vpop.f32.mrf.mxu0 }
 0x122   :  { %3650 = vst [vmem:[#allocation24_spill] sm:$0xff] %v2985_v0  ;;  %v2987_v41 = vadd.f32 %v239_v45, %v143_v60 }
 0x123   :  { %v241_v26 = vpop.f32.mrf.mxu0 }
 0x124   :  { %3651 = vst [vmem:[#allocation25_spill] sm:$0xff] %v2987_v41  ;;  %v2989_v25 = vadd.f32 %v241_v26, %v147_v3  ;;  %v2072_v26 = vpop.f32.mrf.mxu1 }
 0x125   :  { %v245_v44 = vpop.f32.mrf.mxu0 }
 0x126   :  { %3652 = vst [vmem:[#allocation26_spill] sm:$0xff] %v2989_v25  ;;  %v2991_v40 = vadd.f32 %v245_v44, %v143_v60  ;;  %v3003_v44 = vadd.f32 %v2072_v26, %v151_v42 }
 0x127   :  { %v247_v54 = vpop.f32.mrf.mxu0 }
 0x128   :  { %3653 = vst [vmem:[#allocation27_spill] sm:$0xff] %v2991_v40  ;;  %v2993_v62 = vadd.f32 %v247_v54, %v147_v3 }
 0x129   :  { %v251_v11 = vpop.f32.mrf.mxu0 }
 0x12a   :  { %3654 = vst [vmem:[#allocation28_spill] sm:$0xff] %v2993_v62  ;;  %v2995_v5 = vadd.f32 %v251_v11, %v143_v60  ;;  %v222_v62 = vadd.f32 %v221_v50, %v143_v60 }
 0x12b   :  { %v253_v16 = vpop.f32.mrf.mxu0 }
 0x12c   :  { %3655 = vst [vmem:[#allocation29_spill] sm:$0xff] %v2995_v5  ;;  %v2997_v22 = vadd.f32 %v253_v16, %v147_v3  ;;  %v334_v16 = vpop.f32.mrf.mxu1 }
 0x12d   :  { %v257_v0 = vpop.f32.mrf.mxu0 }
 0x12e   :  { %3656 = vst [vmem:[#allocation30_spill] sm:$0xff] %v2997_v22  ;;  %v2999_v45 = vadd.f32 %v257_v0, %v143_v60 }
 0x12f   :  { %v259_v41 = vpop.f32.mrf.mxu0 }
 0x130   :  { %3657 = vst [vmem:[#allocation31_spill] sm:$0xff] %v2999_v45  ;;  %v3001_v25 = vadd.f32 %v259_v41, %v147_v3  ;;  %v224_v41 = vadd.f32 %v223_v56, %v147_v3 }
 0x131   :  { %v263_v40 = vpop.f32.mrf.mxu0 }
 0x132   :  { %3658 = vst [vmem:[#allocation32_spill] sm:$0xff] %v3001_v25  ;;  %v3005_v54 = vadd.f32 %v263_v40, %v143_v60 }
 0x133   :  { %v265_v43 = vpop.f32.mrf.mxu0  ;;  %v2075_v48 = vpop.f32.mrf.mxu1 }
 0x134   :  { %3659 = vst [vmem:[#allocation33_spill] sm:$0xff] %v3005_v54  ;;  %v3007_v11 = vadd.f32 %v265_v43, %v147_v3  ;;  %v3009_v0 = vadd.f32 %v2075_v48, %v151_v42 }
 0x135   :  { %v488_v5 = vpop.f32.mrf.mxu0  ;;  %v344_v24 = vpop.f32.mrf.mxu1 }
 0x136   :  { %3660 = vst [vmem:[#allocation34_spill] sm:$0xff] %v3007_v11  ;;  %v563_v22 = vadd.f32 %v488_v5, %v222_v62  ;;  %3661 = vst [vmem:[#allocation35_spill] sm:$0xff] %v3009_v0  ;;  %v3011_v26 = vadd.f32 %v344_v24, %v151_v42 }
 0x137   :  { %v490_v45 = vpop.f32.mrf.mxu0 }
 0x138   :  { %v1843_v9 = vmul.f32 -1.442695, %v563_v22  ;;  %3662 = vst [vmem:[#allocation36_spill] sm:$0xff] %v3011_v26  ;;  %v2078_v25 = vpop.f32.mrf.mxu1  ;;  %v570_v40 = vadd.f32 %v490_v45, %v224_v41 }
 0x139   :  { %v3013_v54 = vadd.f32 %v2078_v25, %v151_v42  ;;  %v3024_v25 = vld [vmem:[%s3619_s4] ss:$0 sm:$0xff] }
 0x13a   :  { %2408 = vpow2.f32 %v1843_v9  ;;  %v354_v50 = vpop.f32.mrf.mxu1  ;;  %v1844_v11 = vmul.f32 -1.442695, %v570_v40 }
 0x13b   :  { %3663 = vst [vmem:[#allocation37_spill] sm:$0xff] %v3013_v54  ;;  %v3015_v60 = vadd.f32 %v354_v50, %v151_v42  ;;  %v335_v50 = vadd.f32 %v334_v16, %v151_v42  ;;  %v3668_v16 = vld [vmem:[#allocation16_spill] sm:$0xff] }
 0x13c   :  { %v2081_v43 = vpop.f32.mrf.mxu1  ;;  %2410 = vpow2.f32 %v1844_v11 }
 0x13d   :  { %3664 = vst [vmem:[#allocation38_spill] sm:$0xff] %v3015_v60  ;;  %v3017_v5 = vadd.f32 %v2081_v43, %v151_v42 }
 0x13e   :  { %v364_v22 = vpop.f32.mrf.mxu1 }
 0x13f   :  { %3665 = vst [vmem:[#allocation39_spill] sm:$0xff] %v3017_v5  ;;  %v3019_v62 = vadd.f32 %v364_v22, %v151_v42  ;;  %v3667_v42 = vmov 0.0  }
 0x141   :  { %3666 = vst [vmem:[#allocation40_spill] sm:$0xff] %v3019_v62 }
 0x147   :  { %v2409_v48 = vpop.eup %2408 }
 0x148   :  { %v567_v56 = vadd.f32 1.0, %v2409_v48 }
 0x149   :  { %v2411_v24 = vpop.eup %2410 }
 0x14a   :  { %2412 = vrcp.f32 %v567_v56  ;;  %v574_v9 = vadd.f32 1.0, %v2411_v24  ;;  %v3671_v24 = vld [vmem:[#allocation18_spill] sm:$0xff] }
 0x14c   :  { %2414 = vrcp.f32 %v574_v9 }
 0x14e   :  { %v559_v3 = vpop.f32.mrf.mxu1 }
 0x14f   :  { %v583_v41 = vadd.f32 %v3024_v25, %v559_v3  ;;  %v3672_v3 = vld [vmem:[#allocation20_spill] sm:$0xff] }
 0x150   :  { %v2116_v45 = vpop.f32.mrf.mxu1 }
 0x151   :  { %v3673_v45 = vld [vmem:[#allocation15_spill] sm:$0xff] }
 0x157   :  { %v2413_v40 = vpop.eup %2412 }
 0x158   :  { %v584_v43 = vmul.f32 %v2413_v40, %v583_v41  ;;  %v3674_v40 = vld [vmem:[#allocation21_spill] sm:$0xff] }
 0x159   :  { %v2415_v11 = vpop.eup %2414 }
 0x15a   :  { %v585_v22 = vadd.f32 %v584_v43, %v335_v50  ;;  %v587_v48 = vsub.f32 1.0, %v2415_v11  ;;  %v589_v62 = vmul.f32 0.0, %v2415_v11 }
 0x15c   :  { %2416 = vtanh.f32 %v585_v22 }
 0x169   :  { %v2417_v56 = vpop.eup %2416 }
 0x16a   :  { %v588_v5 = vmul.f32 %v2417_v56, %v587_v48  ;;  %v3675_v48 = vld [vmem:[#allocation22_spill] sm:$0xff] }
 0x16c   :  { %v3027_v54 = vadd.f32 %v589_v62, %v588_v5  ;;  %v3669_v5 = vld [vmem:[#allocation19_spill] sm:$0xff]  ;;  %v3670_v62 = vld [vmem:[#allocation17_spill] sm:$0xff] }
 0x16e   :  { %656 = vmatmul.mubr.f32.vlgmr.msra.gmra.mxu0 %v3027_v54  ;;  %2150 = vmatmul.mubr.f32.vlgmr.msra.gmra.mxu1 %v3027_v54 }
 0x16f   :  { %755 = vmatpush1.msra.mxu0 %v2719_v46  ;;  %2153 = vmatpush3.msra.mxu1 %v2819_v21 }
 0x170   :  { %756 = vmatprep.subr.mxu0 %v2721_v47  ;;  %2154 = vmatprep.subr.mxu1 %v3667_v42 }
 0x171   :  { %757 = vmatpush1.msra.mxu0 %v2725_v49  ;;  %2155 = vmatpush3.msra.mxu1 %v2836_v27 }
 0x172   :  { %758 = vmatprep.subr.mxu0 %v2731_v51  ;;  %2156 = vmatprep.subr.mxu1 %v3667_v42 }
 0x173   :  { %759 = vmatpush1.msra.mxu0 %v2734_v52  ;;  %2157 = vmatpush3.msra.mxu1 %v2842_v28 }
 0x174   :  { %760 = vmatprep.subr.mxu0 %v2737_v53  ;;  %2158 = vmatprep.subr.mxu1 %v3667_v42 }
 0x175   :  { %761 = vmatpush1.msra.mxu0 %v2741_v55  ;;  %2159 = vmatpush3.msra.mxu1 %v2848_v29 }
 0x176   :  { %762 = vmatprep.subr.mxu0 %v2747_v57  ;;  %2160 = vmatprep.subr.mxu1 %v3667_v42 }
 0x177   :  { %763 = vmatpush1.msra.mxu0 %v2750_v58  ;;  %2161 = vmatpush3.msra.mxu1 %v2853_v30 }
 0x178   :  { %764 = vmatprep.subr.mxu0 %v2753_v59  ;;  %2162 = vmatprep.subr.mxu1 %v3667_v42 }
 0x179   :  { %765 = vmatpush1.msra.mxu0 %v2757_v61  ;;  %2163 = vmatpush3.msra.mxu1 %v2859_v31 }
 0x17a   :  { %766 = vmatprep.subr.mxu0 %v2763_v63  ;;  %2164 = vmatprep.subr.mxu1 %v3667_v42 }
 0x17b   :  { %767 = vmatpush1.msra.mxu0 %v2766_v1  ;;  %2165 = vmatpush3.msra.mxu1 %v2865_v32 }
 0x17c   :  { %768 = vmatprep.subr.mxu0 %v2769_v2  ;;  %2166 = vmatprep.subr.mxu1 %v3667_v42 }
 0x17d   :  { %769 = vmatpush1.msra.mxu0 %v2773_v4  ;;  %2167 = vmatpush3.msra.mxu1 %v2869_v33 }
 0x17e   :  { %770 = vmatprep.subr.mxu0 %v2779_v6  ;;  %2168 = vmatprep.subr.mxu1 %v3667_v42 }
 0x17f   :  { %771 = vmatpush1.msra.mxu0 %v2782_v7  ;;  %2169 = vmatpush3.msra.mxu1 %v2875_v34 }
 0x180   :  { %772 = vmatprep.subr.mxu0 %v2785_v8  ;;  %2170 = vmatprep.subr.mxu1 %v3667_v42 }
 0x181   :  { %773 = vmatpush1.msra.mxu0 %v2789_v10  ;;  %2171 = vmatpush3.msra.mxu1 %v2881_v35 }
 0x182   :  { %774 = vmatprep.subr.mxu0 %v2793_v12  ;;  %2172 = vmatprep.subr.mxu1 %v3667_v42 }
 0x183   :  { %775 = vmatpush1.msra.mxu0 %v2796_v13  ;;  %2173 = vmatpush3.msra.mxu1 %v2887_v36 }
 0x184   :  { %776 = vmatprep.subr.mxu0 %v2799_v14  ;;  %2174 = vmatprep.subr.mxu1 %v3667_v42 }
 0x185   :  { %777 = vmatpush1.msra.mxu0 %v2802_v15  ;;  %2175 = vmatpush3.msra.mxu1 %v2893_v37 }
 0x186   :  { %778 = vmatprep.subr.mxu0 %v2806_v17  ;;  %2176 = vmatprep.subr.mxu1 %v3667_v42 }
 0x187   :  { %779 = vmatpush1.msra.mxu0 %v2809_v18  ;;  %2177 = vmatpush3.msra.mxu1 %v2899_v38 }
 0x188   :  { %780 = vmatprep.subr.mxu0 %v2813_v19  ;;  %2178 = vmatprep.subr.mxu1 %v3667_v42 }
 0x189   :  { %781 = vmatpush1.msra.mxu0 %v2817_v20  ;;  %2179 = vmatpush3.msra.mxu1 %v2905_v39 }
 0x18a   :  { %782 = vmatprep.subr.mxu0 %v2823_v23  ;;  %2180 = vmatprep.subr.mxu1 %v3667_v42 }
 0x18b   :  { %783 = vmatpush1.msra.mxu0 %v3668_v16  ;;  %2181 = vmatpush3.msra.mxu1 %v3669_v5 }
 0x18c   :  { %784 = vmatprep.subr.mxu0 %v3670_v62  ;;  %2182 = vmatprep.subr.mxu1 %v3667_v42 }
 0x18d   :  { %785 = vmatpush1.msra.mxu0 %v3671_v24  ;;  %818 = vmatprep.mubr.f32.mxu0 %v3667_v42 }
 0x18e   :  { %2183 = vmatpush3.msra.mxu1 %v3672_v3  ;;  %2184 = vmatprep.mubr.msk.f32.mxu1 %vm2654_vm0, %v3667_v42 }
 0x18f   :  { %917 = vmatprep.subr.mxu0 %v3673_v45  ;;  %2187 = vmatprep.subr.mxu1 %v3667_v42 }
 0x22e   :  { %v657_v9 = vpop.f32.mrf.mxu0  ;;  %v728_v41 = vpop.f32.mrf.mxu1 }
 0x22f   :  { %v732_v50 = vadd.f32 %v657_v9, %v3674_v40  ;;  %v746_v45 = vadd.f32 %v3024_v25, %v728_v41 }
 0x230   :  { %v2151_v43 = vpop.f32.mrf.mxu1  ;;  %v659_v11 = vpop.f32.mrf.mxu0 }
 0x231   :  { %v1846_v22 = vmul.f32 -1.442695, %v732_v50  ;;  %v739_v56 = vadd.f32 %v659_v11, %v3675_v48 }
 0x233   :  { %2418 = vpow2.f32 %v1846_v22  ;;  %v1847_v60 = vmul.f32 -1.442695, %v739_v56 }
 0x235   :  { %2420 = vpow2.f32 %v1847_v60 }
 0x240   :  { %v2419_v0 = vpop.eup %2418 }
 0x241   :  { %v736_v26 = vadd.f32 1.0, %v2419_v0  ;;  %v3678_v0 = vld [vmem:[#allocation18_spill] sm:$0xff] }
 0x242   :  { %v2421_v3 = vpop.eup %2420 }
 0x243   :  { %2422 = vrcp.f32 %v736_v26  ;;  %v743_v24 = vadd.f32 1.0, %v2421_v3  ;;  %v3679_v26 = vld [vmem:[#allocation20_spill] sm:$0xff]  ;;  %v3681_v3 = vld [vmem:[#allocation23_spill] sm:$0xff] }
 0x245   :  { %2424 = vrcp.f32 %v743_v24 }
 0x250   :  { %v2423_v62 = vpop.eup %2422 }
 0x251   :  { %v747_v5 = vmul.f32 %v2423_v62, %v746_v45 }
 0x252   :  { %v2425_v40 = vpop.eup %2424 }
 0x253   :  { %v748_v9 = vadd.f32 %v747_v5, %v3003_v44  ;;  %v750_v50 = vsub.f32 1.0, %v2425_v40  ;;  %v752_v11 = vmul.f32 %v2425_v40, %v3027_v54  ;;  %v3676_v44 = vld [vmem:[#allocation19_spill] sm:$0xff]  ;;  %v3677_v54 = vld [vmem:[#allocation17_spill] sm:$0xff] }
 0x254   :  { %v3680_v5 = vld [vmem:[#allocation15_spill] sm:$0xff] }
 0x255   :  { %2426 = vtanh.f32 %v748_v9  ;;  %v3682_v9 = vld [vmem:[#allocation24_spill] sm:$0xff] }
 0x262   :  { %v2427_v43 = vpop.eup %2426 }
 0x263   :  { %v751_v22 = vmul.f32 %v2427_v43, %v750_v50 }
 0x265   :  { %v3103_v60 = vadd.f32 %v752_v11, %v751_v22 }
 0x267   :  { %819 = vmatmul.mubr.f32.vlgmr.msra.gmra.mxu0 %v3103_v60  ;;  %2185 = vmatmul.mubr.f32.vlgmr.msra.gmra.mxu1 %v3103_v60 }
 0x268   :  { %918 = vmatpush1.msra.mxu0 %v2719_v46  ;;  %2188 = vmatpush3.msra.mxu1 %v2819_v21 }
 0x269   :  { %919 = vmatprep.subr.mxu0 %v2721_v47  ;;  %2189 = vmatprep.subr.mxu1 %v3667_v42 }
 0x26a   :  { %920 = vmatpush1.msra.mxu0 %v2725_v49  ;;  %2190 = vmatpush3.msra.mxu1 %v2836_v27 }
 0x26b   :  { %921 = vmatprep.subr.mxu0 %v2731_v51  ;;  %2191 = vmatprep.subr.mxu1 %v3667_v42 }
 0x26c   :  { %922 = vmatpush1.msra.mxu0 %v2734_v52  ;;  %2192 = vmatpush3.msra.mxu1 %v2842_v28 }
 0x26d   :  { %923 = vmatprep.subr.mxu0 %v2737_v53  ;;  %2193 = vmatprep.subr.mxu1 %v3667_v42 }
 0x26e   :  { %924 = vmatpush1.msra.mxu0 %v2741_v55  ;;  %2194 = vmatpush3.msra.mxu1 %v2848_v29 }
 0x26f   :  { %925 = vmatprep.subr.mxu0 %v2747_v57  ;;  %2195 = vmatprep.subr.mxu1 %v3667_v42 }
 0x270   :  { %926 = vmatpush1.msra.mxu0 %v2750_v58  ;;  %2196 = vmatpush3.msra.mxu1 %v2853_v30 }
 0x271   :  { %927 = vmatprep.subr.mxu0 %v2753_v59  ;;  %2197 = vmatprep.subr.mxu1 %v3667_v42 }
 0x272   :  { %928 = vmatpush1.msra.mxu0 %v2757_v61  ;;  %2198 = vmatpush3.msra.mxu1 %v2859_v31 }
 0x273   :  { %929 = vmatprep.subr.mxu0 %v2763_v63  ;;  %2199 = vmatprep.subr.mxu1 %v3667_v42 }
 0x274   :  { %930 = vmatpush1.msra.mxu0 %v2766_v1  ;;  %2200 = vmatpush3.msra.mxu1 %v2865_v32 }
 0x275   :  { %931 = vmatprep.subr.mxu0 %v2769_v2  ;;  %2201 = vmatprep.subr.mxu1 %v3667_v42 }
 0x276   :  { %932 = vmatpush1.msra.mxu0 %v2773_v4  ;;  %2202 = vmatpush3.msra.mxu1 %v2869_v33 }
 0x277   :  { %933 = vmatprep.subr.mxu0 %v2779_v6  ;;  %2203 = vmatprep.subr.mxu1 %v3667_v42 }
 0x278   :  { %934 = vmatpush1.msra.mxu0 %v2782_v7  ;;  %2204 = vmatpush3.msra.mxu1 %v2875_v34 }
 0x279   :  { %935 = vmatprep.subr.mxu0 %v2785_v8  ;;  %2205 = vmatprep.subr.mxu1 %v3667_v42 }
 0x27a   :  { %936 = vmatpush1.msra.mxu0 %v2789_v10  ;;  %2206 = vmatpush3.msra.mxu1 %v2881_v35 }
 0x27b   :  { %937 = vmatprep.subr.mxu0 %v2793_v12  ;;  %2207 = vmatprep.subr.mxu1 %v3667_v42 }
 0x27c   :  { %938 = vmatpush1.msra.mxu0 %v2796_v13  ;;  %2208 = vmatpush3.msra.mxu1 %v2887_v36 }
 0x27d   :  { %939 = vmatprep.subr.mxu0 %v2799_v14  ;;  %2209 = vmatprep.subr.mxu1 %v3667_v42 }
 0x27e   :  { %940 = vmatpush1.msra.mxu0 %v2802_v15  ;;  %2210 = vmatpush3.msra.mxu1 %v2893_v37 }
 0x27f   :  { %941 = vmatprep.subr.mxu0 %v2806_v17  ;;  %2211 = vmatprep.subr.mxu1 %v3667_v42 }
 0x280   :  { %942 = vmatpush1.msra.mxu0 %v2809_v18  ;;  %2212 = vmatpush3.msra.mxu1 %v2899_v38 }
 0x281   :  { %943 = vmatprep.subr.mxu0 %v2813_v19  ;;  %2213 = vmatprep.subr.mxu1 %v3667_v42 }
 0x282   :  { %944 = vmatpush1.msra.mxu0 %v2817_v20  ;;  %2214 = vmatpush3.msra.mxu1 %v2905_v39 }
 0x283   :  { %945 = vmatprep.subr.mxu0 %v2823_v23  ;;  %2215 = vmatprep.subr.mxu1 %v3667_v42 }
 0x284   :  { %946 = vmatpush1.msra.mxu0 %v3668_v16  ;;  %2216 = vmatpush3.msra.mxu1 %v3676_v44  ;;  %v3683_v44 = vld [vmem:[#allocation36_spill] sm:$0xff] }
 0x285   :  { %947 = vmatprep.subr.mxu0 %v3677_v54  ;;  %2217 = vmatprep.subr.mxu1 %v3667_v42 }
 0x286   :  { %948 = vmatpush1.msra.mxu0 %v3678_v0  ;;  %981 = vmatprep.mubr.f32.mxu0 %v3667_v42 }
 0x287   :  { %2218 = vmatpush3.msra.mxu1 %v3679_v26  ;;  %2219 = vmatprep.mubr.msk.f32.mxu1 %vm2654_vm0, %v3667_v42 }
 0x288   :  { %1080 = vmatprep.subr.mxu0 %v3680_v5  ;;  %2222 = vmatprep.subr.mxu1 %v3667_v42 }
 0x327   :  { %v820_v62 = vpop.f32.mrf.mxu0  ;;  %v891_v24 = vpop.f32.mrf.mxu1 }
 0x328   :  { %v895_v45 = vadd.f32 %v820_v62, %v3681_v3  ;;  %v909_v5 = vadd.f32 %v3024_v25, %v891_v24  ;;  %v3279_v24 = vld [vmem:[#allocation7 + $0x138] sm:$0xff] }
 0x329   :  { %v2186_v41 = vpop.f32.mrf.mxu1  ;;  %v822_v56 = vpop.f32.mrf.mxu0 }
 0x32a   :  { %v1848_v48 = vmul.f32 -1.442695, %v895_v45  ;;  %v902_v40 = vadd.f32 %v822_v56, %v3682_v9 }
 0x32c   :  { %2428 = vpow2.f32 %v1848_v48  ;;  %v1849_v50 = vmul.f32 -1.442695, %v902_v40  ;;  %v3283_v40 = vld [vmem:[#allocation7 + $0x128] sm:$0xff] }
 0x32e   :  { %2430 = vpow2.f32 %v1849_v50  ;;  %v3287_v50 = vld [vmem:[#allocation7 + $0x120] sm:$0xff] }
 0x339   :  { %v2429_v43 = vpop.eup %2428 }
 0x33a   :  { %v899_v22 = vadd.f32 1.0, %v2429_v43  ;;  %v3295_v43 = vld [vmem:[#allocation7 + $0x108] sm:$0xff] }
 0x33b   :  { %v2431_v11 = vpop.eup %2430 }
 0x33c   :  { %2432 = vrcp.f32 %v899_v22  ;;  %v906_v26 = vadd.f32 1.0, %v2431_v11  ;;  %v3303_v22 = vld [vmem:[#allocation7 + $0xf0] sm:$0xff]  ;;  %v3311_v11 = vld [vmem:[#allocation7 + $0xd8] sm:$0xff] }
 0x33e   :  { %2434 = vrcp.f32 %v906_v26  ;;  %v3275_v26 = vld [vmem:[#allocation7 + $0x140] sm:$0xff] }
 0x349   :  { %v2433_v0 = vpop.eup %2432 }
 0x34a   :  { %v910_v54 = vmul.f32 %v2433_v0, %v909_v5  ;;  %v3271_v0 = vld [vmem:[#allocation7 + $0x150] sm:$0xff]  ;;  %v3319_v5 = vld [vmem:[#allocation7 + $0xc0] sm:$0xff] }
 0x34b   :  { %v2435_v3 = vpop.eup %2434 }
 0x34c   :  { %v911_v62 = vadd.f32 %v910_v54, %v3683_v44  ;;  %v913_v45 = vsub.f32 1.0, %v2435_v3  ;;  %v915_v56 = vmul.f32 %v2435_v3, %v3103_v60  ;;  %v3261_v60 = vld [vmem:[#allocation7 + $0x168] sm:$0xff]  ;;  %v3264_v44 = vld [vmem:[#allocation7 + $0x178] sm:$0xff]  ;;  %v3335_v3 = vld [vmem:[#allocation7 + $0x90] sm:$0xff] }
 0x34d   :  { %v3267_v54 = vld [vmem:[#allocation7 + $0x158] sm:$0xff] }
 0x34e   :  { %2436 = vtanh.f32 %v911_v62  ;;  %v3327_v62 = vld [vmem:[#allocation7 + $0xa8] sm:$0xff] }
 0x35b   :  { %v2437_v41 = vpop.eup %2436 }
 0x35c   :  { %v914_v48 = vmul.f32 %v2437_v41, %v913_v45  ;;  %v3343_v45 = vld [vmem:[#allocation7 + $0x78] sm:$0xff]  ;;  %v3351_v41 = vld [vmem:[#allocation7 + $0x60] sm:$0xff] }
 0x35e   :  { %v3179_v9 = vadd.f32 %v915_v56, %v914_v48  ;;  %v3359_v48 = vld [vmem:[#allocation7 + $0x48] sm:$0xff]  ;;  %v3367_v56 = vld [vmem:[#allocation7 + $0x30] sm:$0xff] }
 0x360   :  { %982 = vmatmul.mubr.f32.vlgmr.msra.gmra.mxu0 %v3179_v9  ;;  %2220 = vmatmul.mubr.f32.vlgmr.msra.gmra.mxu1 %v3179_v9 }
 0x361   :  { %1081 = vmatpush1.msra.mxu0 %v2719_v46  ;;  %2223 = vmatpush3.msra.mxu1 %v2819_v21  ;;  %v3684_v46 = vld [vmem:[#allocation19_spill] sm:$0xff] }
 0x362   :  { %1082 = vmatprep.subr.mxu0 %v2721_v47  ;;  %2224 = vmatprep.subr.mxu1 %v3667_v42  ;;  %v3685_v47 = vld [vmem:[#allocation17_spill] sm:$0xff] }
 0x363   :  { %1083 = vmatpush1.msra.mxu0 %v2725_v49  ;;  %2225 = vmatpush3.msra.mxu1 %v2836_v27  ;;  %v3686_v49 = vld [vmem:[#allocation18_spill] sm:$0xff] }
 0x364   :  { %1084 = vmatprep.subr.mxu0 %v2731_v51  ;;  %2226 = vmatprep.subr.mxu1 %v3667_v42  ;;  %v3687_v51 = vld [vmem:[#allocation20_spill] sm:$0xff] }
 0x365   :  { %1085 = vmatpush1.msra.mxu0 %v2734_v52  ;;  %2227 = vmatpush3.msra.mxu1 %v2842_v28  ;;  %v3248_v52 = vld [vmem:[#allocation7 + $0x170] sm:$0xff] }
 0x366   :  { %1086 = vmatprep.subr.mxu0 %v2737_v53  ;;  %2228 = vmatprep.subr.mxu1 %v3667_v42 }
 0x367   :  { %1087 = vmatpush1.msra.mxu0 %v2741_v55  ;;  %2229 = vmatpush3.msra.mxu1 %v2848_v29 }
 0x368   :  { %1088 = vmatprep.subr.mxu0 %v2747_v57  ;;  %2230 = vmatprep.subr.mxu1 %v3667_v42  ;;  %v3688_v57 = vld [vmem:[#allocation25_spill] sm:$0xff] }
 0x369   :  { %1089 = vmatpush1.msra.mxu0 %v2750_v58  ;;  %2231 = vmatpush3.msra.mxu1 %v2853_v30 }
 0x36a   :  { %1090 = vmatprep.subr.mxu0 %v2753_v59  ;;  %2232 = vmatprep.subr.mxu1 %v3667_v42 }
 0x36b   :  { %1091 = vmatpush1.msra.mxu0 %v2757_v61  ;;  %2233 = vmatpush3.msra.mxu1 %v2859_v31 }
 0x36c   :  { %1092 = vmatprep.subr.mxu0 %v2763_v63  ;;  %2234 = vmatprep.subr.mxu1 %v3667_v42 }
 0x36d   :  { %1093 = vmatpush1.msra.mxu0 %v2766_v1  ;;  %2235 = vmatpush3.msra.mxu1 %v2865_v32  ;;  %v3689_v1 = vld [vmem:[#allocation26_spill] sm:$0xff] }
 0x36e   :  { %1094 = vmatprep.subr.mxu0 %v2769_v2  ;;  %2236 = vmatprep.subr.mxu1 %v3667_v42 }
 0x36f   :  { %1095 = vmatpush1.msra.mxu0 %v2773_v4  ;;  %2237 = vmatpush3.msra.mxu1 %v2869_v33 }
 0x370   :  { %1096 = vmatprep.subr.mxu0 %v2779_v6  ;;  %2238 = vmatprep.subr.mxu1 %v3667_v42 }
 0x371   :  { %1097 = vmatpush1.msra.mxu0 %v2782_v7  ;;  %2239 = vmatpush3.msra.mxu1 %v2875_v34 }
 0x372   :  { %1098 = vmatprep.subr.mxu0 %v2785_v8  ;;  %2240 = vmatprep.subr.mxu1 %v3667_v42 }
 0x373   :  { %1099 = vmatpush1.msra.mxu0 %v2789_v10  ;;  %2241 = vmatpush3.msra.mxu1 %v2881_v35 }
 0x374   :  { %1100 = vmatprep.subr.mxu0 %v2793_v12  ;;  %2242 = vmatprep.subr.mxu1 %v3667_v42 }
 0x375   :  { %1101 = vmatpush1.msra.mxu0 %v2796_v13  ;;  %2243 = vmatpush3.msra.mxu1 %v2887_v36 }
 0x376   :  { %1102 = vmatprep.subr.mxu0 %v2799_v14  ;;  %2244 = vmatprep.subr.mxu1 %v3667_v42 }
 0x377   :  { %1103 = vmatpush1.msra.mxu0 %v2802_v15  ;;  %2245 = vmatpush3.msra.mxu1 %v2893_v37  ;;  %v3690_v15 = vld [vmem:[#allocation35_spill] sm:$0xff] }
 0x378   :  { %1104 = vmatprep.subr.mxu0 %v2806_v17  ;;  %2246 = vmatprep.subr.mxu1 %v3667_v42 }
 0x379   :  { %1105 = vmatpush1.msra.mxu0 %v2809_v18  ;;  %2247 = vmatpush3.msra.mxu1 %v2899_v38 }
 0x37a   :  { %1106 = vmatprep.subr.mxu0 %v2813_v19  ;;  %2248 = vmatprep.subr.mxu1 %v3667_v42 }
 0x37b   :  { %1107 = vmatpush1.msra.mxu0 %v2817_v20  ;;  %2249 = vmatpush3.msra.mxu1 %v2905_v39 }
 0x37c   :  { %1108 = vmatprep.subr.mxu0 %v2823_v23  ;;  %2250 = vmatprep.subr.mxu1 %v3667_v42 }
 0x37d   :  { %1109 = vmatpush1.msra.mxu0 %v3668_v16  ;;  %2251 = vmatpush3.msra.mxu1 %v3684_v46 }
 0x37e   :  { %1110 = vmatprep.subr.mxu0 %v3685_v47  ;;  %2252 = vmatprep.subr.mxu1 %v3667_v42  ;;  %v3383_v47 = vld [vmem:[#allocation7] sm:$0xff] }
 0x37f   :  { %1111 = vmatpush1.msra.mxu0 %v3686_v49  ;;  %1144 = vmatprep.mubr.f32.mxu0 %v3667_v42  ;;  %3692 = vst [vmem:[#allocation21_spill] sm:$0xff] %v3383_v47  ;;  %v3693_v49 = vld [vmem:[#allocation27_spill] sm:$0xff] }
 0x380   :  { %2253 = vmatpush3.msra.mxu1 %v3687_v51  ;;  %2254 = vmatprep.mubr.msk.f32.mxu1 %vm2654_vm0, %v3667_v42 }
 0x381   :  { %1243 = vmatprep.subr.mxu0 %v3248_v52  ;;  %2257 = vmatprep.subr.mxu1 %v3667_v42 }
 0x420   :  { %v983_v53 = vpop.f32.mrf.mxu0  ;;  %v1054_v55 = vpop.f32.mrf.mxu1 }
 0x421   :  { %v1058_v58 = vadd.f32 %v983_v53, %v3688_v57  ;;  %v1072_v12 = vadd.f32 %v3024_v25, %v1054_v55 }
 0x422   :  { %v2221_v59 = vpop.f32.mrf.mxu1  ;;  %v985_v63 = vpop.f32.mrf.mxu0 }
 0x423   :  { %v1850_v61 = vmul.f32 -1.442695, %v1058_v58  ;;  %v1065_v2 = vadd.f32 %v985_v63, %v3689_v1  ;;  %v3694_v59 = vld [vmem:[#allocation28_spill] sm:$0xff] }
 0x425   :  { %2438 = vpow2.f32 %v1850_v61  ;;  %v1851_v4 = vmul.f32 -1.442695, %v1065_v2 }
 0x427   :  { %2440 = vpow2.f32 %v1851_v4 }
 0x432   :  { %v2439_v6 = vpop.eup %2438 }
 0x433   :  { %v1062_v7 = vadd.f32 1.0, %v2439_v6 }
 0x434   :  { %v2441_v8 = vpop.eup %2440 }
 0x435   :  { %2442 = vrcp.f32 %v1062_v7  ;;  %v1069_v10 = vadd.f32 1.0, %v2441_v8 }
 0x437   :  { %2444 = vrcp.f32 %v1069_v10  ;;  %v3695_v10 = vld [vmem:[#allocation38_spill] sm:$0xff] }
 0x442   :  { %v2443_v13 = vpop.eup %2442 }
 0x443   :  { %v1073_v14 = vmul.f32 %v2443_v13, %v1072_v12 }
 0x444   :  { %v2445_v18 = vpop.eup %2444 }
 0x445   :  { %v1074_v17 = vadd.f32 %v1073_v14, %v3690_v15  ;;  %v1076_v19 = vsub.f32 1.0, %v2445_v18  ;;  %v1078_v23 = vmul.f32 %v2445_v18, %v3179_v9  ;;  %v3375_v9 = vld [vmem:[#allocation7 + $0x18] sm:$0xff] }
 0x447   :  { %2446 = vtanh.f32 %v1074_v17 }
 0x454   :  { %v2447_v20 = vpop.eup %2446 }
 0x455   :  { %v1077_v21 = vmul.f32 %v2447_v20, %v1076_v19  ;;  %v3406_v20 = vld [vmem:[#allocation7 + $0x160] sm:$0xff] }
 0x457   :  { %v3257_v16 = vadd.f32 %v1078_v23, %v1077_v21  ;;  %v3412_v21 = vld [vmem:[#allocation7 + $0x148] sm:$0xff]  ;;  %v3418_v23 = vld [vmem:[#allocation7 + $0x130] sm:$0xff] }
 0x459   :  { %1145 = vmatmul.mubr.f32.vlgmr.msra.gmra.mxu0 %v3257_v16  ;;  %2255 = vmatmul.mubr.f32.vlgmr.msra.gmra.mxu1 %v3257_v16 }
 0x45a   :  { %1244 = vmatpush1.msra.mxu0 %v3261_v60  ;;  %2258 = vmatpush3.msra.mxu1 %v3264_v44 }
 0x45b   :  { %1245 = vmatprep.subr.mxu0 %v3267_v54  ;;  %2259 = vmatprep.subr.mxu1 %v3667_v42 }
 0x45c   :  { %1246 = vmatpush1.msra.mxu0 %v3271_v0  ;;  %2260 = vmatpush3.msra.mxu1 %v2836_v27  ;;  %v3291_v27 = vld [vmem:[#allocation7 + $0x110] sm:$0xff] }
 0x45d   :  { %1247 = vmatprep.subr.mxu0 %v3275_v26  ;;  %2261 = vmatprep.subr.mxu1 %v3667_v42 }
 0x45e   :  { %1248 = vmatpush1.msra.mxu0 %v3279_v24  ;;  %2262 = vmatpush3.msra.mxu1 %v2842_v28  ;;  %v3299_v28 = vld [vmem:[#allocation7 + $0xf8] sm:$0xff] }
 0x45f   :  { %1249 = vmatprep.subr.mxu0 %v3283_v40  ;;  %2263 = vmatprep.subr.mxu1 %v3667_v42 }
 0x460   :  { %1250 = vmatpush1.msra.mxu0 %v3287_v50  ;;  %2264 = vmatpush3.msra.mxu1 %v2848_v29  ;;  %v3307_v29 = vld [vmem:[#allocation7 + $0xe0] sm:$0xff] }
 0x461   :  { %1251 = vmatprep.subr.mxu0 %v3291_v27  ;;  %2265 = vmatprep.subr.mxu1 %v3667_v42 }
 0x462   :  { %1252 = vmatpush1.msra.mxu0 %v3295_v43  ;;  %2266 = vmatpush3.msra.mxu1 %v2853_v30  ;;  %v3315_v30 = vld [vmem:[#allocation7 + $0xc8] sm:$0xff] }
 0x463   :  { %1253 = vmatprep.subr.mxu0 %v3299_v28  ;;  %2267 = vmatprep.subr.mxu1 %v3667_v42 }
 0x464   :  { %1254 = vmatpush1.msra.mxu0 %v3303_v22  ;;  %2268 = vmatpush3.msra.mxu1 %v2859_v31  ;;  %v3323_v31 = vld [vmem:[#allocation7 + $0xb0] sm:$0xff] }
 0x465   :  { %1255 = vmatprep.subr.mxu0 %v3307_v29  ;;  %2269 = vmatprep.subr.mxu1 %v3667_v42 }
 0x466   :  { %1256 = vmatpush1.msra.mxu0 %v3311_v11  ;;  %2270 = vmatpush3.msra.mxu1 %v2865_v32  ;;  %v3331_v32 = vld [vmem:[#allocation7 + $0x98] sm:$0xff] }
 0x467   :  { %1257 = vmatprep.subr.mxu0 %v3315_v30  ;;  %2271 = vmatprep.subr.mxu1 %v3667_v42 }
 0x468   :  { %1258 = vmatpush1.msra.mxu0 %v3319_v5  ;;  %2272 = vmatpush3.msra.mxu1 %v2869_v33  ;;  %v3339_v33 = vld [vmem:[#allocation7 + $0x80] sm:$0xff] }
 0x469   :  { %1259 = vmatprep.subr.mxu0 %v3323_v31  ;;  %2273 = vmatprep.subr.mxu1 %v3667_v42 }
 0x46a   :  { %1260 = vmatpush1.msra.mxu0 %v3327_v62  ;;  %2274 = vmatpush3.msra.mxu1 %v2875_v34  ;;  %v3347_v34 = vld [vmem:[#allocation7 + $0x68] sm:$0xff] }
 0x46b   :  { %1261 = vmatprep.subr.mxu0 %v3331_v32  ;;  %2275 = vmatprep.subr.mxu1 %v3667_v42 }
 0x46c   :  { %1262 = vmatpush1.msra.mxu0 %v3335_v3  ;;  %2276 = vmatpush3.msra.mxu1 %v2881_v35  ;;  %v3355_v35 = vld [vmem:[#allocation7 + $0x50] sm:$0xff] }
 0x46d   :  { %1263 = vmatprep.subr.mxu0 %v3339_v33  ;;  %2277 = vmatprep.subr.mxu1 %v3667_v42 }
 0x46e   :  { %1264 = vmatpush1.msra.mxu0 %v3343_v45  ;;  %2278 = vmatpush3.msra.mxu1 %v2887_v36  ;;  %v3363_v36 = vld [vmem:[#allocation7 + $0x38] sm:$0xff] }
 0x46f   :  { %1265 = vmatprep.subr.mxu0 %v3347_v34  ;;  %2279 = vmatprep.subr.mxu1 %v3667_v42 }
 0x470   :  { %1266 = vmatpush1.msra.mxu0 %v3351_v41  ;;  %2280 = vmatpush3.msra.mxu1 %v2893_v37  ;;  %v3371_v37 = vld [vmem:[#allocation7 + $0x20] sm:$0xff] }
 0x471   :  { %1267 = vmatprep.subr.mxu0 %v3355_v35  ;;  %2281 = vmatprep.subr.mxu1 %v3667_v42 }
 0x472   :  { %1268 = vmatpush1.msra.mxu0 %v3359_v48  ;;  %2282 = vmatpush3.msra.mxu1 %v2899_v38  ;;  %v3379_v38 = vld [vmem:[#allocation7 + $0x8] sm:$0xff] }
 0x473   :  { %1269 = vmatprep.subr.mxu0 %v3363_v36  ;;  %2283 = vmatprep.subr.mxu1 %v3667_v42  ;;  %3691 = vst [vmem:[#allocation16_spill] sm:$0xff] %v3379_v38 }
 0x474   :  { %1270 = vmatpush1.msra.mxu0 %v3367_v56  ;;  %2284 = vmatpush3.msra.mxu1 %v2905_v39 }
 0x475   :  { %1271 = vmatprep.subr.mxu0 %v3371_v37  ;;  %2285 = vmatprep.subr.mxu1 %v3667_v42 }
 0x476   :  { %1272 = vmatpush1.msra.mxu0 %v3375_v9  ;;  %2286 = vmatpush3.msra.mxu1 %v3684_v46 }
 0x477   :  { %1273 = vmatprep.subr.mxu0 %v3379_v38  ;;  %2287 = vmatprep.subr.mxu1 %v3667_v42 }
 0x478   :  { %1274 = vmatpush1.msra.mxu0 %v3383_v47  ;;  %1307 = vmatprep.mubr.f32.mxu0 %v3667_v42 }
 0x479   :  { %2288 = vmatpush3.msra.mxu1 %v3687_v51  ;;  %2289 = vmatprep.mubr.msk.f32.mxu1 %vm2654_vm0, %v3667_v42 }
 0x47a   :  { %1406 = vmatprep.subr.mxu0 %v3248_v52  ;;  %2292 = vmatprep.subr.mxu1 %v3667_v42 }
 0x519   :  { %v1146_v39 = vpop.f32.mrf.mxu0  ;;  %v1217_v46 = vpop.f32.mrf.mxu1 }
 0x51a   :  { %v1221_v53 = vadd.f32 %v1146_v39, %v3693_v49  ;;  %v1235_v6 = vadd.f32 %v3024_v25, %v1217_v46  ;;  %v3430_v39 = vld [vmem:[#allocation7 + $0x100] sm:$0xff]  ;;  %v3436_v46 = vld [vmem:[#allocation7 + $0xe8] sm:$0xff]  ;;  %v3442_v49 = vld [vmem:[#allocation7 + $0xd0] sm:$0xff] }
 0x51b   :  { %v2256_v55 = vpop.f32.mrf.mxu1  ;;  %v1148_v58 = vpop.f32.mrf.mxu0 }
 0x51c   :  { %v1852_v57 = vmul.f32 -1.442695, %v1221_v53  ;;  %v1228_v61 = vadd.f32 %v1148_v58, %v3694_v59  ;;  %v3448_v53 = vld [vmem:[#allocation7 + $0xb8] sm:$0xff]  ;;  %v3454_v55 = vld [vmem:[#allocation7 + $0xa0] sm:$0xff]  ;;  %v3466_v58 = vld [vmem:[#allocation7 + $0x70] sm:$0xff] }
 0x51d   :  { %v3472_v59 = vld [vmem:[#allocation7 + $0x58] sm:$0xff] }
 0x51e   :  { %2448 = vpow2.f32 %v1852_v57  ;;  %v1853_v63 = vmul.f32 -1.442695, %v1228_v61  ;;  %v3460_v57 = vld [vmem:[#allocation7 + $0x88] sm:$0xff]  ;;  %v3478_v61 = vld [vmem:[#allocation7 + $0x40] sm:$0xff] }
 0x520   :  { %2450 = vpow2.f32 %v1853_v63  ;;  %v3484_v63 = vld [vmem:[#allocation7 + $0x28] sm:$0xff] }
 0x521   :  { %3696 = vst [vmem:[#allocation22_spill] sm:$0xff] %v3484_v63 }
 0x52b   :  { %v2449_v51 = vpop.eup %2448 }
 0x52c   :  { %v1225_v1 = vadd.f32 1.0, %v2449_v51  ;;  %v3491_v51 = vld [vmem:[#allocation7 + $0x10] sm:$0xff] }
 0x52d   :  { %v2451_v2 = vpop.eup %2450  ;;  %3697 = vst [vmem:[#allocation15_spill] sm:$0xff] %v3491_v51 }
 0x52e   :  { %2452 = vrcp.f32 %v1225_v1  ;;  %v1232_v4 = vadd.f32 1.0, %v2451_v2 }
 0x530   :  { %2454 = vrcp.f32 %v1232_v4  ;;  %v3698_v4 = vld [vmem:[#allocation29_spill] sm:$0xff] }
 0x53b   :  { %v2453_v7 = vpop.eup %2452 }
 0x53c   :  { %v1236_v8 = vmul.f32 %v2453_v7, %v1235_v6 }
 0x53d   :  { %v2455_v13 = vpop.eup %2454 }
 0x53e   :  { %v1237_v12 = vadd.f32 %v1236_v8, %v3695_v10  ;;  %v1239_v14 = vsub.f32 1.0, %v2455_v13  ;;  %v1241_v18 = vmul.f32 %v2455_v13, %v3257_v16  ;;  %v3424_v16 = vld [vmem:[#allocation7 + $0x118] sm:$0xff] }
 0x540   :  { %2456 = vtanh.f32 %v1237_v12  ;;  %v3699_v12 = vld [vmem:[#allocation30_spill] sm:$0xff] }
 0x54d   :  { %v2457_v15 = vpop.eup %2456 }
 0x54e   :  { %v1240_v17 = vmul.f32 %v2457_v15, %v1239_v14 }
 0x550   :  { %v3397_v19 = vadd.f32 %v1241_v18, %v1240_v17 }
 0x552   :  { %1308 = vmatmul.mubr.f32.vlgmr.msra.gmra.mxu0 %v3397_v19  ;;  %2290 = vmatmul.mubr.f32.vlgmr.msra.gmra.mxu1 %v3397_v19 }
 0x553   :  { %1407 = vmatpush1.msra.mxu0 %v3261_v60  ;;  %2293 = vmatpush3.msra.mxu1 %v3264_v44 }
 0x554   :  { %1408 = vmatprep.subr.mxu0 %v3267_v54  ;;  %2294 = vmatprep.subr.mxu1 %v3667_v42 }
 0x555   :  { %1409 = vmatpush1.msra.mxu0 %v3271_v0  ;;  %2295 = vmatpush3.msra.mxu1 %v3406_v20 }
 0x556   :  { %1410 = vmatprep.subr.mxu0 %v3275_v26  ;;  %2296 = vmatprep.subr.mxu1 %v3667_v42 }
 0x557   :  { %1411 = vmatpush1.msra.mxu0 %v3279_v24  ;;  %2297 = vmatpush3.msra.mxu1 %v3412_v21 }
 0x558   :  { %1412 = vmatprep.subr.mxu0 %v3283_v40  ;;  %2298 = vmatprep.subr.mxu1 %v3667_v42 }
 0x559   :  { %1413 = vmatpush1.msra.mxu0 %v3287_v50  ;;  %2299 = vmatpush3.msra.mxu1 %v3418_v23 }
 0x55a   :  { %1414 = vmatprep.subr.mxu0 %v3291_v27  ;;  %2300 = vmatprep.subr.mxu1 %v3667_v42 }
 0x55b   :  { %1415 = vmatpush1.msra.mxu0 %v3295_v43  ;;  %2301 = vmatpush3.msra.mxu1 %v3424_v16 }
 0x55c   :  { %1416 = vmatprep.subr.mxu0 %v3299_v28  ;;  %2302 = vmatprep.subr.mxu1 %v3667_v42 }
 0x55d   :  { %1417 = vmatpush1.msra.mxu0 %v3303_v22  ;;  %2303 = vmatpush3.msra.mxu1 %v3430_v39 }
 0x55e   :  { %1418 = vmatprep.subr.mxu0 %v3307_v29  ;;  %2304 = vmatprep.subr.mxu1 %v3667_v42 }
 0x55f   :  { %1419 = vmatpush1.msra.mxu0 %v3311_v11  ;;  %2305 = vmatpush3.msra.mxu1 %v3436_v46 }
 0x560   :  { %1420 = vmatprep.subr.mxu0 %v3315_v30  ;;  %2306 = vmatprep.subr.mxu1 %v3667_v42 }
 0x561   :  { %1421 = vmatpush1.msra.mxu0 %v3319_v5  ;;  %2307 = vmatpush3.msra.mxu1 %v3442_v49 }
 0x562   :  { %1422 = vmatprep.subr.mxu0 %v3323_v31  ;;  %2308 = vmatprep.subr.mxu1 %v3667_v42 }
 0x563   :  { %1423 = vmatpush1.msra.mxu0 %v3327_v62  ;;  %2309 = vmatpush3.msra.mxu1 %v3448_v53 }
 0x564   :  { %1424 = vmatprep.subr.mxu0 %v3331_v32  ;;  %2310 = vmatprep.subr.mxu1 %v3667_v42 }
 0x565   :  { %1425 = vmatpush1.msra.mxu0 %v3335_v3  ;;  %2311 = vmatpush3.msra.mxu1 %v3454_v55 }
 0x566   :  { %1426 = vmatprep.subr.mxu0 %v3339_v33  ;;  %2312 = vmatprep.subr.mxu1 %v3667_v42 }
 0x567   :  { %1427 = vmatpush1.msra.mxu0 %v3343_v45  ;;  %2313 = vmatpush3.msra.mxu1 %v3460_v57 }
 0x568   :  { %1428 = vmatprep.subr.mxu0 %v3347_v34  ;;  %2314 = vmatprep.subr.mxu1 %v3667_v42 }
 0x569   :  { %1429 = vmatpush1.msra.mxu0 %v3351_v41  ;;  %2315 = vmatpush3.msra.mxu1 %v3466_v58 }
 0x56a   :  { %1430 = vmatprep.subr.mxu0 %v3355_v35  ;;  %2316 = vmatprep.subr.mxu1 %v3667_v42 }
 0x56b   :  { %1431 = vmatpush1.msra.mxu0 %v3359_v48  ;;  %2317 = vmatpush3.msra.mxu1 %v3472_v59 }
 0x56c   :  { %1432 = vmatprep.subr.mxu0 %v3363_v36  ;;  %2318 = vmatprep.subr.mxu1 %v3667_v42 }
 0x56d   :  { %1433 = vmatpush1.msra.mxu0 %v3367_v56  ;;  %2319 = vmatpush3.msra.mxu1 %v3478_v61 }
 0x56e   :  { %1434 = vmatprep.subr.mxu0 %v3371_v37  ;;  %2320 = vmatprep.subr.mxu1 %v3667_v42 }
 0x56f   :  { %1435 = vmatpush1.msra.mxu0 %v3375_v9  ;;  %2321 = vmatpush3.msra.mxu1 %v3484_v63  ;;  %v3700_v63 = vld [vmem:[#allocation37_spill] sm:$0xff] }
 0x570   :  { %1436 = vmatprep.subr.mxu0 %v3379_v38  ;;  %2322 = vmatprep.subr.mxu1 %v3667_v42 }
 0x571   :  { %1437 = vmatpush1.msra.mxu0 %v3383_v47  ;;  %1470 = vmatprep.mubr.f32.mxu0 %v3667_v42 }
 0x572   :  { %2323 = vmatpush3.msra.mxu1 %v3491_v51  ;;  %2324 = vmatprep.mubr.msk.f32.mxu1 %vm2654_vm0, %v3667_v42 }
 0x573   :  { %1569 = vmatprep.subr.mxu0 %v3248_v52  ;;  %2327 = vmatprep.subr.mxu1 %v3667_v42 }
 0x612   :  { %v1309_v1 = vpop.f32.mrf.mxu0  ;;  %v1380_v2 = vpop.f32.mrf.mxu1 }
 0x613   :  { %v1384_v6 = vadd.f32 %v1309_v1, %v3698_v4  ;;  %v1398_v52 = vadd.f32 %v3024_v25, %v1380_v2  ;;  %v3701_v25 = vld [vmem:[#allocation22_spill] sm:$0xff] }
 0x614   :  { %v2291_v7 = vpop.f32.mrf.mxu1  ;;  %v1311_v10 = vpop.f32.mrf.mxu0 }
 0x615   :  { %v1854_v8 = vmul.f32 -1.442695, %v1384_v6  ;;  %v1391_v13 = vadd.f32 %v1311_v10, %v3699_v12 }
 0x617   :  { %2458 = vpow2.f32 %v1854_v8  ;;  %v1855_v14 = vmul.f32 -1.442695, %v1391_v13 }
 0x619   :  { %2460 = vpow2.f32 %v1855_v14 }
 0x624   :  { %v2459_v15 = vpop.eup %2458 }
 0x625   :  { %v1388_v17 = vadd.f32 1.0, %v2459_v15 }
 0x626   :  { %v2461_v18 = vpop.eup %2460 }
 0x627   :  { %2462 = vrcp.f32 %v1388_v17  ;;  %v1395_v51 = vadd.f32 1.0, %v2461_v18  ;;  %v3709_v17 = vld [vmem:[#allocation34_spill] sm:$0xff] }
 0x629   :  { %2464 = vrcp.f32 %v1395_v51  ;;  %v3708_v51 = vld [vmem:[#allocation33_spill] sm:$0xff] }
 0x634   :  { %v2463_v47 = vpop.eup %2462 }
 0x635   :  { %v1399_v38 = vmul.f32 %v2463_v47, %v1398_v52  ;;  %v1745_v47 = vld [vmem:[#allocation8 + $0x68] sm:$0xff] }
 0x636   :  { %v2465_v4 = vpop.eup %2464 }
 0x637   :  { %v1400_v1 = vadd.f32 %v1399_v38, %v3700_v63  ;;  %v1402_v6 = vsub.f32 1.0, %v2465_v4  ;;  %v1404_v10 = vmul.f32 %v2465_v4, %v3397_v19  ;;  %v1746_v38 = vld [vmem:[#allocation8 + $0x70] sm:$0xff]  ;;  %v1744_v19 = vld [vmem:[#allocation8 + $0x60] sm:$0xff] }
 0x639   :  { %2466 = vtanh.f32 %v1400_v1 }
 0x646   :  { %v2467_v7 = vpop.eup %2466 }
 0x647   :  { %v1403_v8 = vmul.f32 %v2467_v7, %v1402_v6 }
 0x649   :  { %v3503_v12 = vadd.f32 %v1404_v10, %v1403_v8 }
 0x64b   :  { %1471 = vmatmul.mubr.f32.vlgmr.msra.gmra.mxu0 %v3503_v12  ;;  %2325 = vmatmul.mubr.f32.vlgmr.msra.gmra.mxu1 %v3503_v12 }
 0x64c   :  { %1570 = vmatpush1.msra.mxu0 %v3261_v60  ;;  %2328 = vmatpush3.msra.mxu1 %v3264_v44  ;;  %v3702_v60 = vld [vmem:[#allocation16_spill] sm:$0xff]  ;;  %v3703_v44 = vld [vmem:[#allocation21_spill] sm:$0xff] }
 0x64d   :  { %1571 = vmatprep.subr.mxu0 %v3267_v54  ;;  %2329 = vmatprep.subr.mxu1 %v3667_v42  ;;  %v3704_v54 = vld [vmem:[#allocation15_spill] sm:$0xff] }
 0x64e   :  { %1572 = vmatpush1.msra.mxu0 %v3271_v0  ;;  %2330 = vmatpush3.msra.mxu1 %v3406_v20  ;;  %v1743_v20 = vld [vmem:[#allocation8 + $0x58] sm:$0xff] }
 0x64f   :  { %1573 = vmatprep.subr.mxu0 %v3275_v26  ;;  %2331 = vmatprep.subr.mxu1 %v3667_v42 }
 0x650   :  { %1574 = vmatpush1.msra.mxu0 %v3279_v24  ;;  %2332 = vmatpush3.msra.mxu1 %v3412_v21  ;;  %v3705_v24 = vld [vmem:[#allocation31_spill] sm:$0xff]  ;;  %v1742_v21 = vld [vmem:[#allocation8 + $0x50] sm:$0xff] }
 0x651   :  { %1575 = vmatprep.subr.mxu0 %v3283_v40  ;;  %2333 = vmatprep.subr.mxu1 %v3667_v42 }
 0x652   :  { %1576 = vmatpush1.msra.mxu0 %v3287_v50  ;;  %2334 = vmatpush3.msra.mxu1 %v3418_v23  ;;  %v1741_v23 = vld [vmem:[#allocation8 + $0x48] sm:$0xff] }
 0x653   :  { %1577 = vmatprep.subr.mxu0 %v3291_v27  ;;  %2335 = vmatprep.subr.mxu1 %v3667_v42 }
 0x654   :  { %1578 = vmatpush1.msra.mxu0 %v3295_v43  ;;  %2336 = vmatpush3.msra.mxu1 %v3424_v16  ;;  %v1740_v16 = vld [vmem:[#allocation8 + $0x40] sm:$0xff] }
 0x655   :  { %1579 = vmatprep.subr.mxu0 %v3299_v28  ;;  %2337 = vmatprep.subr.mxu1 %v3667_v42  ;;  %v3706_v28 = vld [vmem:[#allocation32_spill] sm:$0xff] }
 0x656   :  { %1580 = vmatpush1.msra.mxu0 %v3303_v22  ;;  %2338 = vmatpush3.msra.mxu1 %v3430_v39  ;;  %v1739_v39 = vld [vmem:[#allocation8 + $0x38] sm:$0xff] }
 0x657   :  { %1581 = vmatprep.subr.mxu0 %v3307_v29  ;;  %2339 = vmatprep.subr.mxu1 %v3667_v42 }
 0x658   :  { %1582 = vmatpush1.msra.mxu0 %v3311_v11  ;;  %2340 = vmatpush3.msra.mxu1 %v3436_v46  ;;  %v1738_v46 = vld [vmem:[#allocation8 + $0x30] sm:$0xff] }
 0x659   :  { %1583 = vmatprep.subr.mxu0 %v3315_v30  ;;  %2341 = vmatprep.subr.mxu1 %v3667_v42 }
 0x65a   :  { %1584 = vmatpush1.msra.mxu0 %v3319_v5  ;;  %2342 = vmatpush3.msra.mxu1 %v3442_v49  ;;  %v1737_v49 = vld [vmem:[#allocation8 + $0x28] sm:$0xff] }
 0x65b   :  { %1585 = vmatprep.subr.mxu0 %v3323_v31  ;;  %2343 = vmatprep.subr.mxu1 %v3667_v42 }
 0x65c   :  { %1586 = vmatpush1.msra.mxu0 %v3327_v62  ;;  %2344 = vmatpush3.msra.mxu1 %v3448_v53  ;;  %v3578_v62 = vld [vmem:[%s3619_s4] ss:$0 sm:$0xff] }
 0x65d   :  { %1587 = vmatprep.subr.mxu0 %v3331_v32  ;;  %2345 = vmatprep.subr.mxu1 %v3667_v42  ;;  %v1736_v53 = vld [vmem:[#allocation8 + $0x20] sm:$0xff] }
 0x65e   :  { %1588 = vmatpush1.msra.mxu0 %v3335_v3  ;;  %2346 = vmatpush3.msra.mxu1 %v3454_v55  ;;  %v1735_v55 = vld [vmem:[#allocation8 + $0x18] sm:$0xff] }
 0x65f   :  { %1589 = vmatprep.subr.mxu0 %v3339_v33  ;;  %2347 = vmatprep.subr.mxu1 %v3667_v42 }
 0x660   :  { %1590 = vmatpush1.msra.mxu0 %v3343_v45  ;;  %2348 = vmatpush3.msra.mxu1 %v3460_v57  ;;  %v3707_v45 = vld [vmem:[#allocation40_spill] sm:$0xff] }
 0x661   :  { %1591 = vmatprep.subr.mxu0 %v3347_v34  ;;  %2349 = vmatprep.subr.mxu1 %v3667_v42  ;;  %v1734_v57 = vld [vmem:[#allocation8 + $0x10] sm:$0xff] }
 0x662   :  { %1592 = vmatpush1.msra.mxu0 %v3351_v41  ;;  %2350 = vmatpush3.msra.mxu1 %v3466_v58  ;;  %v1733_v58 = vld [vmem:[#allocation8 + $0x8] sm:$0xff] }
 0x663   :  { %1593 = vmatprep.subr.mxu0 %v3355_v35  ;;  %2351 = vmatprep.subr.mxu1 %v3667_v42 }
 0x664   :  { %1594 = vmatpush1.msra.mxu0 %v3359_v48  ;;  %2352 = vmatpush3.msra.mxu1 %v3472_v59  ;;  %v1732_v59 = vld [vmem:[#allocation8] sm:$0xff] }
 0x665   :  { %1595 = vmatprep.subr.mxu0 %v3363_v36  ;;  %2353 = vmatprep.subr.mxu1 %v3667_v42 }
 0x666   :  { %1596 = vmatpush1.msra.mxu0 %v3367_v56  ;;  %2354 = vmatpush3.msra.mxu1 %v3478_v61 }
 0x667   :  { %1597 = vmatprep.subr.mxu0 %v3371_v37  ;;  %2355 = vmatprep.subr.mxu1 %v3667_v42 }
 0x668   :  { %1598 = vmatpush1.msra.mxu0 %v3375_v9  ;;  %2356 = vmatpush3.msra.mxu1 %v3701_v25  ;;  %v1747_v9 = vld [vmem:[#allocation8 + $0x78] sm:$0xff] }
 0x669   :  { %1599 = vmatprep.subr.mxu0 %v3702_v60  ;;  %2357 = vmatprep.subr.mxu1 %v3667_v42 }
 0x66a   :  { %1600 = vmatpush1.msra.mxu0 %v3703_v44  ;;  %1633 = vmatprep.mubr.f32.mxu0 %v3667_v42 }
 0x66b   :  { %2358 = vmatpush3.msra.mxu1 %v3704_v54  ;;  %2359 = vmatprep.mubr.msk.f32.mxu1 %vm2654_vm0, %v3667_v42 }
 0x66c   :  { %2362 = vmatprep.subr.mxu0 %v3667_v42 }
 0x70b   :  { %v1472_v0 = vpop.f32.mrf.mxu0  ;;  %v1543_v26 = vpop.f32.mrf.mxu1 }
 0x70c   :  { %v1547_v40 = vadd.f32 %v1472_v0, %v3705_v24  ;;  %v1561_v32 = vadd.f32 %v3578_v62, %v1543_v26 }
 0x70d   :  { %v2326_v50 = vpop.f32.mrf.mxu1  ;;  %v1474_v43 = vpop.f32.mrf.mxu0 }
 0x70e   :  { %v1856_v27 = vmul.f32 -1.442695, %v1547_v40  ;;  %v1554_v22 = vadd.f32 %v1474_v43, %v3706_v28  ;;  %v1860_v40 = vld [vmem:[%s3621_s6] ss:$0 sm:$0xff] }
 0x710   :  { %2468 = vpow2.f32 %v1856_v27  ;;  %v1857_v29 = vmul.f32 -1.442695, %v1554_v22 }
 0x712   :  { %2470 = vpow2.f32 %v1857_v29 }
 0x71d   :  { %v2469_v11 = vpop.eup %2468 }
 0x71e   :  { %v1551_v30 = vadd.f32 1.0, %v2469_v11 }
 0x71f   :  { %v2471_v5 = vpop.eup %2470 }
 0x720   :  { %2472 = vrcp.f32 %v1551_v30  ;;  %v1558_v31 = vadd.f32 1.0, %v2471_v5 }
 0x722   :  { %2474 = vrcp.f32 %v1558_v31 }
 0x72d   :  { %v2473_v3 = vpop.eup %2472 }
 0x72e   :  { %v1562_v33 = vmul.f32 %v2473_v3, %v1561_v32 }
 0x72f   :  { %v2475_v41 = vpop.eup %2474 }
 0x730   :  { %v1563_v34 = vadd.f32 %v1562_v33, %v3707_v45  ;;  %v1565_v35 = vsub.f32 1.0, %v2475_v41  ;;  %v1567_v56 = vmul.f32 %v2475_v41, %v3503_v12  ;;  %v3710_v12 = vld [vmem:[#allocation39_spill] sm:$0xff] }
 0x732   :  { %2476 = vtanh.f32 %v1563_v34 }
 0x73f   :  { %v2477_v48 = vpop.eup %2476 }
 0x740   :  { %v1566_v36 = vmul.f32 %v2477_v48, %v1565_v35 }
 0x742   :  { %v3583_v37 = vadd.f32 %v1567_v56, %v1566_v36 }
 0x744   :  { %1634 = vmatmul.mubr.f32.vlgmr.msra.gmra.mxu0 %v3583_v37  ;;  %2360 = vmatmul.mubr.f32.vlgmr.msra.gmra.mxu1 %v3583_v37 }
 0x745   :  { %2394 = vmatprep.mubr.msk.f32.mxu0 %vm2654_vm0, %v3667_v42  ;;  %2363 = vmatpush3.msra.mxu0 %v1747_v9 }
 0x746   :  { %2364 = vmatprep.subr.mxu0 %v3667_v42 }
 0x747   :  { %2365 = vmatpush3.msra.mxu0 %v1746_v38 }
 0x748   :  { %2366 = vmatprep.subr.mxu0 %v3667_v42 }
 0x749   :  { %2367 = vmatpush3.msra.mxu0 %v1745_v47 }
 0x74a   :  { %2368 = vmatprep.subr.mxu0 %v3667_v42 }
 0x74b   :  { %2369 = vmatpush3.msra.mxu0 %v1744_v19 }
 0x74c   :  { %2370 = vmatprep.subr.mxu0 %v3667_v42 }
 0x74d   :  { %2371 = vmatpush3.msra.mxu0 %v1743_v20 }
 0x74e   :  { %2372 = vmatprep.subr.mxu0 %v3667_v42 }
 0x74f   :  { %2373 = vmatpush3.msra.mxu0 %v1742_v21 }
 0x750   :  { %2374 = vmatprep.subr.mxu0 %v3667_v42 }
 0x751   :  { %2375 = vmatpush3.msra.mxu0 %v1741_v23 }
 0x752   :  { %2376 = vmatprep.subr.mxu0 %v3667_v42 }
 0x753   :  { %2377 = vmatpush3.msra.mxu0 %v1740_v16 }
 0x754   :  { %2378 = vmatprep.subr.mxu0 %v3667_v42 }
 0x755   :  { %2379 = vmatpush3.msra.mxu0 %v1739_v39 }
 0x756   :  { %2380 = vmatprep.subr.mxu0 %v3667_v42 }
 0x757   :  { %2381 = vmatpush3.msra.mxu0 %v1738_v46 }
 0x758   :  { %2382 = vmatprep.subr.mxu0 %v3667_v42 }
 0x759   :  { %2383 = vmatpush3.msra.mxu0 %v1737_v49 }
 0x75a   :  { %2384 = vmatprep.subr.mxu0 %v3667_v42 }
 0x75b   :  { %2385 = vmatpush3.msra.mxu0 %v1736_v53 }
 0x75c   :  { %2386 = vmatprep.subr.mxu0 %v3667_v42 }
 0x75d   :  { %2387 = vmatpush3.msra.mxu0 %v1735_v55 }
 0x75e   :  { %2388 = vmatprep.subr.mxu0 %v3667_v42 }
 0x75f   :  { %2389 = vmatpush3.msra.mxu0 %v1734_v57 }
 0x760   :  { %2390 = vmatprep.subr.mxu0 %v3667_v42 }
 0x761   :  { %2391 = vmatpush3.msra.mxu0 %v1733_v58 }
 0x762   :  { %2392 = vmatprep.subr.mxu0 %v3667_v42 }
 0x763   :  { %2393 = vmatpush3.msra.mxu0 %v1732_v59 }
 0x804   :  { %v1635_v61 = vpop.f32.mrf.mxu0  ;;  %v1706_v63 = vpop.f32.mrf.mxu1 }
 0x805   :  { %v1710_v2 = vadd.f32 %v1635_v61, %v3708_v51  ;;  %v1724_v42 = vadd.f32 %v3578_v62, %v1706_v63 }
 0x806   :  { %v2361_v13 = vpop.f32.mrf.mxu1  ;;  %v1637_v15 = vpop.f32.mrf.mxu0 }
 0x807   :  { %v1858_v14 = vmul.f32 -1.442695, %v1710_v2  ;;  %v1717_v18 = vadd.f32 %v1637_v15, %v3709_v17 }
 0x809   :  { %2478 = vpow2.f32 %v1858_v14  ;;  %v1859_v52 = vmul.f32 -1.442695, %v1717_v18 }
 0x80b   :  { %2480 = vpow2.f32 %v1859_v52 }
 0x816   :  { %v2479_v1 = vpop.eup %2478 }
 0x817   :  { %v1714_v4 = vadd.f32 1.0, %v2479_v1 }
 0x818   :  { %v2481_v6 = vpop.eup %2480 }
 0x819   :  { %2482 = vrcp.f32 %v1714_v4  ;;  %v1721_v7 = vadd.f32 1.0, %v2481_v6 }
 0x81b   :  { %2484 = vrcp.f32 %v1721_v7 }
 0x826   :  { %v2483_v8 = vpop.eup %2482 }
 0x827   :  { %v1725_v10 = vmul.f32 %v2483_v8, %v1724_v42 }
 0x828   :  { %v2485_v60 = vpop.eup %2484 }
 0x829   :  { %v1726_v25 = vadd.f32 %v1725_v10, %v3710_v12  ;;  %v1728_v44 = vsub.f32 1.0, %v2485_v60  ;;  %v1730_v26 = vmul.f32 %v2485_v60, %v3583_v37 }
 0x82b   :  { %2486 = vtanh.f32 %v1726_v25 }
 0x838   :  { %v2487_v54 = vpop.eup %2486 }
 0x839   :  { %v1729_v0 = vmul.f32 %v2487_v54, %v1728_v44 }
 0x83b   :  { %v1731_v24 = vadd.f32 %v1730_v26, %v1729_v0 }
 0x83d   :  { %2395 = vmatmul.mubr.f32.vlgmr.msra.gmra.mxu0 %v1731_v24 }
 0x8fd   :  { %v1821_v50 = vpop.f32.mrf.mxu0 }
 0x8fe   :  { %v1822_v27 = vadd.f32 %v1860_v40, %v1821_v50 }
 0x8ff   :  { %v2396_v43 = vpop.f32.mrf.mxu0 }
 0x900   :  { %1825 = vst [vmem:[#allocation10] sm:$0xff] %v1822_v27 }
 0x901   :  { %2628 = shalt.err (!%p2625_p10)
}
 0x902   :  { %1835 = dma.vmem_to_hbm [thread:$0]  %s1833_s28, 128, %s3622_s7, [#allocation4]  }
 0x903   :  { %2643 = dma.done.wait [#allocation4], 128  }
 0x904   :  { %2644 = vsyncadd [#allocation4], 4294967168 }
 0x905   :  { %1839 = vsyncpa [#allocation3], 1 }
 0x906   :  { %1840 = vsyncpa [#allocation6], 1 }
 0x907   :  { %1841 = vsyncpa [#allocation9], 1 }
 0x908   :  { %1842 = vsyncpa [#allocation4], 1 }

</bundles_post_ra>
